<compile_context>
chip_gen: v7x
topology: tpu7x:2x2x1
jax: 0.10.0
libtpu: 0.0.40
codegen_flags: <defaults>
</compile_context>

<pallas_src>
import functools
import math

import jax
import jax.numpy as jnp
from jax.experimental import pallas as pl
from jax.experimental.pallas import tpu as pltpu


def _layer_norm(x, gamma, beta, eps=1e-5):
    mean = jnp.mean(x, axis=-1, keepdims=True)
    var = jnp.mean((x - mean) ** 2, axis=-1, keepdims=True)
    return (x - mean) * jax.lax.rsqrt(var + eps) * gamma + beta


def encoder_layer_kernel(
    srcq_ref, srcf_ref, bias_ref,
    wq_ref, bq_ref, wk_ref, bk_ref, wv_ref, bv_ref, wo_ref, bo_ref,
    lng_ref, lnb_ref,
    w1_ref, b1_ref, w2_ref, b2_ref,
    out_ref,
    *, n_heads,
):
    xq = srcq_ref[0]                       # (tq, H) f32 — query rows for this tile
    xf = srcf_ref[0]                       # (S,  H) f32 — full sequence (keys/values)
    tq, H = xq.shape
    S = xf.shape[0]
    dh = H // n_heads

    xq_b = xq.astype(jnp.bfloat16)
    xf_b = xf.astype(jnp.bfloat16)

    # ---- q/k/v projections: bf16 MXU operands, f32 accumulation ----
    # Wq/bq are pre-scaled by 1/sqrt(dh) on the host.
    q = jnp.dot(xq_b, wq_ref[...], preferred_element_type=jnp.float32) + bq_ref[...]
    k = jnp.dot(xf_b, wk_ref[...], preferred_element_type=jnp.float32) + bk_ref[...]
    v = jnp.dot(xf_b, wv_ref[...], preferred_element_type=jnp.float32) + bv_ref[...]

    # Head-batched layout (n_heads, tq/S, dh).  Single reshape+swapaxes relayout per
    # tensor (kept: mismatched-rank einsum projections are not a safe Mosaic pattern).
    q3 = jnp.swapaxes(q.reshape(tq, n_heads, dh), 0, 1).astype(jnp.bfloat16)
    k3 = jnp.swapaxes(k.reshape(S, n_heads, dh), 0, 1).astype(jnp.bfloat16)
    v3 = jnp.swapaxes(v.reshape(S, n_heads, dh), 0, 1).astype(jnp.bfloat16)

    # ---- scaled-dot-product attention with stable softmax (f32) ----
    energy = jnp.einsum("hqd,hkd->hqk", q3, k3,
                        preferred_element_type=jnp.float32)          # (h, tq, S)
    energy = energy + bias_ref[...]                                  # (1,1,S) additive mask
    energy = energy - jnp.max(energy, axis=-1, keepdims=True)
    p = jnp.exp(energy)
    denom = jnp.sum(p, axis=-1, keepdims=True)                       # >= 1 by construction
    r = pl.reciprocal(denom, approx=True)                            # EUP slot
    r = r * (2.0 - denom * r)                                        # Newton refine (tiny)
    p = (p * r).astype(jnp.bfloat16)                                 # bf16 into PV matmul

    ctx = jnp.einsum("hqk,hkd->hqd", p, v3,
                     preferred_element_type=jnp.float32)             # (h, tq, dh)
    concat = jnp.swapaxes(ctx, 0, 1).reshape(tq, H).astype(jnp.bfloat16)
    sa = jnp.dot(concat, wo_ref[...], preferred_element_type=jnp.float32) + bo_ref[...]

    gamma = lng_ref[...]                                             # (1, H)
    beta = lnb_ref[...]

    # residual + shared LayerNorm (the module reuses the same self.ln twice)
    x1 = _layer_norm(xq + sa, gamma, beta)

    # ---- positionwise feedforward (Conv1d k=1 == per-token linear) ----
    h1 = jnp.maximum(
        jnp.dot(x1.astype(jnp.bfloat16), w1_ref[...],
                preferred_element_type=jnp.float32) + b1_ref[...], 0.0)
    h2 = jnp.dot(h1.astype(jnp.bfloat16), w2_ref[...],
                 preferred_element_type=jnp.float32) + b2_ref[...]

    out_ref[0] = _layer_norm(x1 + h2, gamma, beta)


def encoder_layer(src, src_mask, params, *, n_heads, q_tile=None):
    B, S, H = src.shape
    pf = params["w1"].shape[1]
    assert H % n_heads == 0, "hid_dim must be divisible by n_heads"
    dh = H // n_heads

    # Query tile: 128 rows at realistic sizes, whole sequence when it is small.
    if q_tile is None:
        q_tile = 128 if (S > 128 and S % 128 == 0) else S
    assert S % q_tile == 0
    n_qt = S // q_tile

    # ---- host-side parameter prep ----
    # TODO(synk): scale uses 1/sqrt(head_dim); the injected self_attention class may
    # instead scale by sqrt(hid_dim) — adjust here if so.
    inv_scale = jnp.float32(1.0 / math.sqrt(dh))
    f32 = jnp.float32
    bf16 = jnp.bfloat16
    wq = (params["wq"] * inv_scale).astype(bf16)
    bq = (params["bq"] * inv_scale).astype(f32)
    wk, bk = params["wk"].astype(bf16), params["bk"].astype(f32)
    wv, bv = params["wv"].astype(bf16), params["bv"].astype(f32)
    wo, bo = params["wo"].astype(bf16), params["bo"].astype(f32)
    w1, b1 = params["w1"].astype(bf16), params["b1"].astype(f32)
    w2, b2 = params["w2"].astype(bf16), params["b2"].astype(f32)
    ln_g, ln_b = params["ln_g"].astype(f32), params["ln_b"].astype(f32)

    # Additive key-mask bias: 0 where keep, -1e10 where masked. Shape (B, 1, S).
    mask_bias = ((src_mask.astype(f32) - 1.0) * f32(1e10)).reshape(B, 1, S)

    # Grid-invariant weights/biases: single-buffered (index_map constant over the grid).
    def const_spec(shape):
        return pl.BlockSpec(shape, lambda b, qi: (0, 0), pipeline_mode=pl.Buffered(1))

    grid_spec = pltpu.PrefetchScalarGridSpec(
        num_scalar_prefetch=0,
        grid=(B, n_qt),
        in_specs=[
            pl.BlockSpec((1, q_tile, H), lambda b, qi: (b, qi, 0)),  # query rows tile
            pl.BlockSpec((1, S, H), lambda b, qi: (b, 0, 0)),        # full seq for K/V
            pl.BlockSpec((1, 1, S), lambda b, qi: (b, 0, 0)),        # mask bias
            const_spec((H, H)), const_spec((1, H)),                  # Wq, bq
            const_spec((H, H)), const_spec((1, H)),                  # Wk, bk
            const_spec((H, H)), const_spec((1, H)),                  # Wv, bv
            const_spec((H, H)), const_spec((1, H)),                  # Wo, bo
            const_spec((1, H)), const_spec((1, H)),                  # ln gamma, beta
            const_spec((H, pf)), const_spec((1, pf)),                # W1, b1
            const_spec((pf, H)), const_spec((1, H)),                 # W2, b2
        ],
        out_specs=pl.BlockSpec((1, q_tile, H), lambda b, qi: (b, qi, 0)),
    )

    # Explicit VMEM budget: single-buffered bf16 weights + double-buffered activations
    # + in-kernel intermediates, with 2x headroom, capped at 64 MiB (valid on v7x too).
    w_bytes = 2 * (4 * H * H + 2 * H * pf)
    small_bytes = 4 * (7 * H + pf)
    act_bytes = 4 * 2 * (2 * q_tile * H + S * H + S)
    inter_bytes = 4 * (3 * S * H + 2 * n_heads * q_tile * S
                       + n_heads * q_tile * dh + 2 * q_tile * pf + 6 * q_tile * H)
    needed = w_bytes + small_bytes + act_bytes + inter_bytes
    vmem_limit = int(min(max(2 * needed, 16 * 2**20), 64 * 2**20))

    # Advisory cost hint for XLA's scheduler around the fused custom call.
    n_param_bytes = 2 * (4 * H * H + 2 * H * pf) + 4 * (7 * H + pf)
    cost = pl.CostEstimate(
        flops=int(B * (8 * S * H * H + 4 * S * S * H + 4 * S * H * pf)),
        transcendentals=int(B * n_heads * S * S + 2 * B * S),
        bytes_accessed=int(4 * (2 * B * S * H + B * S) + n_param_bytes),
    )

    kernel = functools.partial(encoder_layer_kernel, n_heads=n_heads)
    return pl.pallas_call(
        kernel,
        out_shape=jax.ShapeDtypeStruct((B, S, H), jnp.float32),
        grid_spec=grid_spec,
        compiler_params=pltpu.CompilerParams(
            dimension_semantics=("parallel", "parallel"),
            vmem_limit_bytes=vmem_limit,
        ),
        cost_estimate=cost,
    )(
        src, src, mask_bias,
        wq, bq, wk, bk, wv, bv, wo, bo,
        ln_g, ln_b,
        w1, b1, w2, b2,
    )


def init_params(key, hid_dim, pf_dim):
    keys = jax.random.split(key, 8)
    n = lambda k, shape: (0.02 * jax.random.normal(k, shape)).astype(jnp.float32)
    return {
        "wq": n(keys[0], (hid_dim, hid_dim)), "bq": jnp.zeros((1, hid_dim), jnp.float32),
        "wk": n(keys[1], (hid_dim, hid_dim)), "bk": jnp.zeros((1, hid_dim), jnp.float32),
        "wv": n(keys[2], (hid_dim, hid_dim)), "bv": jnp.zeros((1, hid_dim), jnp.float32),
        "wo": n(keys[3], (hid_dim, hid_dim)), "bo": jnp.zeros((1, hid_dim), jnp.float32),
        "ln_g": jnp.ones((1, hid_dim), jnp.float32),
        "ln_b": jnp.zeros((1, hid_dim), jnp.float32),
        "w1": n(keys[4], (hid_dim, pf_dim)), "b1": jnp.zeros((1, pf_dim), jnp.float32),
        "w2": n(keys[5], (pf_dim, hid_dim)), "b2": jnp.zeros((1, hid_dim), jnp.float32),
    }


if __name__ == "__main__":
    B, S, H, n_heads, pf_dim = 2, 8, 32, 4, 64

    key = jax.random.PRNGKey(0)
    k_src, k_params = jax.random.split(key)
    src = jax.random.normal(k_src, (B, S, H), dtype=jnp.float32)

    # 1.0 = attend, 0.0 = masked key position (last key of batch 1 masked out)
    src_mask = jnp.ones((B, S), dtype=jnp.float32).at[1, -1].set(0.0)

    params = init_params(k_params, H, pf_dim)

    out = encoder_layer(src, src_mask, params, n_heads=n_heads)
    jax.block_until_ready(out)
    assert out.shape == (B, S, H) and bool(jnp.all(jnp.isfinite(out)))
    print("KERNEL_OK")
</pallas_src>

<mosaic_0001>
module attributes {stable_mosaic.version = 11 : i64} {
  func.func @encoder_layer_kernel(%arg0: i32, %arg1: i32, %arg2: memref<1x8x32xf32, #tpu.memory_space<vmem>>, %arg3: memref<1x8x32xf32, #tpu.memory_space<vmem>>, %arg4: memref<1x1x8xf32, #tpu.memory_space<vmem>>, %arg5: memref<32x32xbf16, #tpu.memory_space<vmem>>, %arg6: memref<1x32xf32, #tpu.memory_space<vmem>>, %arg7: memref<32x32xbf16, #tpu.memory_space<vmem>>, %arg8: memref<1x32xf32, #tpu.memory_space<vmem>>, %arg9: memref<32x32xbf16, #tpu.memory_space<vmem>>, %arg10: memref<1x32xf32, #tpu.memory_space<vmem>>, %arg11: memref<32x32xbf16, #tpu.memory_space<vmem>>, %arg12: memref<1x32xf32, #tpu.memory_space<vmem>>, %arg13: memref<1x32xf32, #tpu.memory_space<vmem>>, %arg14: memref<1x32xf32, #tpu.memory_space<vmem>>, %arg15: memref<32x64xbf16, #tpu.memory_space<vmem>>, %arg16: memref<1x64xf32, #tpu.memory_space<vmem>>, %arg17: memref<64x32xbf16, #tpu.memory_space<vmem>>, %arg18: memref<1x32xf32, #tpu.memory_space<vmem>>, %arg19: memref<1x8x32xf32, #tpu.memory_space<vmem>>) attributes {dimension_semantics = [#tpu.dimension_semantics<parallel>, #tpu.dimension_semantics<parallel>], iteration_bounds = array<i64: 2, 1>, scalar_prefetch = 0 : i64, scratch_operands = 0 : i64, tpu.core_type = #tpu.core_type<tc>, window_params = [{transform_indices = @transform_0, window_bounds = array<i64: 1, 8, 32>}, {transform_indices = @transform_1, window_bounds = array<i64: 1, 8, 32>}, {transform_indices = @transform_2, window_bounds = array<i64: 1, 1, 8>}, {pipeline_mode = #tpu.pipeline_mode<synchronous>, transform_indices = @transform_3, window_bounds = array<i64: 32, 32>}, {pipeline_mode = #tpu.pipeline_mode<synchronous>, transform_indices = @transform_4, window_bounds = array<i64: 1, 32>}, {pipeline_mode = #tpu.pipeline_mode<synchronous>, transform_indices = @transform_5, window_bounds = array<i64: 32, 32>}, {pipeline_mode = #tpu.pipeline_mode<synchronous>, transform_indices = @transform_6, window_bounds = array<i64: 1, 32>}, {pipeline_mode = #tpu.pipeline_mode<synchronous>, transform_indices = @transform_7, window_bounds = array<i64: 32, 32>}, {pipeline_mode = #tpu.pipeline_mode<synchronous>, transform_indices = @transform_8, window_bounds = array<i64: 1, 32>}, {pipeline_mode = #tpu.pipeline_mode<synchronous>, transform_indices = @transform_9, window_bounds = array<i64: 32, 32>}, {pipeline_mode = #tpu.pipeline_mode<synchronous>, transform_indices = @transform_10, window_bounds = array<i64: 1, 32>}, {pipeline_mode = #tpu.pipeline_mode<synchronous>, transform_indices = @transform_11, window_bounds = array<i64: 1, 32>}, {pipeline_mode = #tpu.pipeline_mode<synchronous>, transform_indices = @transform_12, window_bounds = array<i64: 1, 32>}, {pipeline_mode = #tpu.pipeline_mode<synchronous>, transform_indices = @transform_13, window_bounds = array<i64: 32, 64>}, {pipeline_mode = #tpu.pipeline_mode<synchronous>, transform_indices = @transform_14, window_bounds = array<i64: 1, 64>}, {pipeline_mode = #tpu.pipeline_mode<synchronous>, transform_indices = @transform_15, window_bounds = array<i64: 64, 32>}, {pipeline_mode = #tpu.pipeline_mode<synchronous>, transform_indices = @transform_16, window_bounds = array<i64: 1, 32>}, {transform_indices = @transform_17, window_bounds = array<i64: 1, 8, 32>}]} {
    %c0 = arith.constant 0 : index
    %c0_0 = arith.constant 0 : index
    %c0_1 = arith.constant 0 : index
    %0 = vector.load %arg2[%c0, %c0_0, %c0_1] : memref<1x8x32xf32, #tpu.memory_space<vmem>>, vector<1x8x32xf32>
    %1 = vector.shape_cast %0 : vector<1x8x32xf32> to vector<8x32xf32>
    %c0_2 = arith.constant 0 : index
    %c0_3 = arith.constant 0 : index
    %c0_4 = arith.constant 0 : index
    %2 = vector.load %arg3[%c0_2, %c0_3, %c0_4] : memref<1x8x32xf32, #tpu.memory_space<vmem>>, vector<1x8x32xf32>
    %3 = vector.shape_cast %2 : vector<1x8x32xf32> to vector<8x32xf32>
    %4 = arith.truncf %1 : vector<8x32xf32> to vector<8x32xbf16>
    %5 = arith.truncf %3 : vector<8x32xf32> to vector<8x32xbf16>
    %c0_5 = arith.constant 0 : index
    %c0_6 = arith.constant 0 : index
    %6 = vector.load %arg5[%c0_5, %c0_6] : memref<32x32xbf16, #tpu.memory_space<vmem>>, vector<32x32xbf16>
    %cst = arith.constant dense<0.000000e+00> : vector<8x32xf32>
    %7 = tpu.matmul %4, %6, %cst {dimension_numbers = #tpu.dot_dimension_numbers<[1], [0], [0], [1], [0, 0, 1, 1], [], []>} : vector<8x32xbf16>, vector<32x32xbf16>, vector<8x32xf32> -> vector<8x32xf32>
    %c0_7 = arith.constant 0 : index
    %c0_8 = arith.constant 0 : index
    %8 = vector.load %arg6[%c0_7, %c0_8] : memref<1x32xf32, #tpu.memory_space<vmem>>, vector<1x32xf32>
    %9 = vector.broadcast %8 : vector<1x32xf32> to vector<8x32xf32>
    %10 = arith.addf %7, %9 : vector<8x32xf32>
    %c0_9 = arith.constant 0 : index
    %c0_10 = arith.constant 0 : index
    %11 = vector.load %arg7[%c0_9, %c0_10] : memref<32x32xbf16, #tpu.memory_space<vmem>>, vector<32x32xbf16>
    %cst_11 = arith.constant dense<0.000000e+00> : vector<8x32xf32>
    %12 = tpu.matmul %5, %11, %cst_11 {dimension_numbers = #tpu.dot_dimension_numbers<[1], [0], [0], [1], [0, 0, 1, 1], [], []>} : vector<8x32xbf16>, vector<32x32xbf16>, vector<8x32xf32> -> vector<8x32xf32>
    %c0_12 = arith.constant 0 : index
    %c0_13 = arith.constant 0 : index
    %13 = vector.load %arg8[%c0_12, %c0_13] : memref<1x32xf32, #tpu.memory_space<vmem>>, vector<1x32xf32>
    %14 = vector.broadcast %13 : vector<1x32xf32> to vector<8x32xf32>
    %15 = arith.addf %12, %14 : vector<8x32xf32>
    %c0_14 = arith.constant 0 : index
    %c0_15 = arith.constant 0 : index
    %16 = vector.load %arg9[%c0_14, %c0_15] : memref<32x32xbf16, #tpu.memory_space<vmem>>, vector<32x32xbf16>
    %cst_16 = arith.constant dense<0.000000e+00> : vector<8x32xf32>
    %17 = tpu.matmul %5, %16, %cst_16 {dimension_numbers = #tpu.dot_dimension_numbers<[1], [0], [0], [1], [0, 0, 1, 1], [], []>} : vector<8x32xbf16>, vector<32x32xbf16>, vector<8x32xf32> -> vector<8x32xf32>
    %c0_17 = arith.constant 0 : index
    %c0_18 = arith.constant 0 : index
    %18 = vector.load %arg10[%c0_17, %c0_18] : memref<1x32xf32, #tpu.memory_space<vmem>>, vector<1x32xf32>
    %19 = vector.broadcast %18 : vector<1x32xf32> to vector<8x32xf32>
    %20 = arith.addf %17, %19 : vector<8x32xf32>
    %21 = vector.shape_cast %10 : vector<8x32xf32> to vector<8x4x8xf32>
    %22 = tpu.transpose %21, [1, 0, 2] : vector<8x4x8xf32> -> vector<4x8x8xf32>
    %23 = arith.truncf %22 : vector<4x8x8xf32> to vector<4x8x8xbf16>
    %24 = vector.shape_cast %15 : vector<8x32xf32> to vector<8x4x8xf32>
    %25 = tpu.transpose %24, [1, 0, 2] : vector<8x4x8xf32> -> vector<4x8x8xf32>
    %26 = arith.truncf %25 : vector<4x8x8xf32> to vector<4x8x8xbf16>
    %27 = vector.shape_cast %20 : vector<8x32xf32> to vector<8x4x8xf32>
    %28 = tpu.transpose %27, [1, 0, 2] : vector<8x4x8xf32> -> vector<4x8x8xf32>
    %29 = arith.truncf %28 : vector<4x8x8xf32> to vector<4x8x8xbf16>
    "tpu.trace_start"() <{level = 10 : i32, message = "hqd,hkd->hqk"}> : () -> ()
    %cst_19 = arith.constant dense<0.000000e+00> : vector<4x8x8xf32>
    %30 = tpu.matmul %23, %26, %cst_19 {dimension_numbers = #tpu.dot_dimension_numbers<[2], [2], [1], [1], [0, 0, 0, 1, 1, 1], [0], [0]>} : vector<4x8x8xbf16>, vector<4x8x8xbf16>, vector<4x8x8xf32> -> vector<4x8x8xf32>
    "tpu.trace_stop"() : () -> ()
    %c0_20 = arith.constant 0 : index
    %c0_21 = arith.constant 0 : index
    %c0_22 = arith.constant 0 : index
    %31 = vector.load %arg4[%c0_20, %c0_21, %c0_22] : memref<1x1x8xf32, #tpu.memory_space<vmem>>, vector<1x1x8xf32>
    %32 = vector.broadcast %31 : vector<1x1x8xf32> to vector<4x8x8xf32>
    %33 = arith.addf %30, %32 : vector<4x8x8xf32>
    %cst_23 = arith.constant dense<0xFF800000> : vector<4x8xf32>
    %34 = vector.multi_reduction <maximumf>, %33, %cst_23 [2] : vector<4x8x8xf32> to vector<4x8xf32>
    %35 = vector.shape_cast %34 : vector<4x8xf32> to vector<4x8x1xf32>
    %36 = vector.broadcast %35 : vector<4x8x1xf32> to vector<4x8x8xf32>
    %37 = arith.subf %33, %36 : vector<4x8x8xf32>
    %38 = math.exp %37 : vector<4x8x8xf32>
    %cst_24 = arith.constant dense<0.000000e+00> : vector<4x8xf32>
    %39 = vector.multi_reduction <add>, %38, %cst_24 [2] : vector<4x8x8xf32> to vector<4x8xf32>
    %40 = vector.shape_cast %39 : vector<4x8xf32> to vector<4x8x1xf32>
    %41 = tpu.reciprocal %40 {approx = true} : vector<4x8x1xf32> -> vector<4x8x1xf32>
    %42 = arith.mulf %40, %41 : vector<4x8x1xf32>
    %cst_25 = arith.constant 2.000000e+00 : f32
    %43 = vector.broadcast %cst_25 : f32 to vector<4x8x1xf32>
    %44 = arith.subf %43, %42 : vector<4x8x1xf32>
    %45 = arith.mulf %41, %44 : vector<4x8x1xf32>
    %46 = vector.broadcast %45 : vector<4x8x1xf32> to vector<4x8x8xf32>
    %47 = arith.mulf %38, %46 : vector<4x8x8xf32>
    %48 = arith.truncf %47 : vector<4x8x8xf32> to vector<4x8x8xbf16>
    "tpu.trace_start"() <{level = 10 : i32, message = "hqk,hkd->hqd"}> : () -> ()
    %cst_26 = arith.constant dense<0.000000e+00> : vector<4x8x8xf32>
    %49 = tpu.matmul %48, %29, %cst_26 {dimension_numbers = #tpu.dot_dimension_numbers<[2], [1], [1], [2], [0, 0, 0, 1, 1, 2], [0], [0]>} : vector<4x8x8xbf16>, vector<4x8x8xbf16>, vector<4x8x8xf32> -> vector<4x8x8xf32>
    "tpu.trace_stop"() : () -> ()
    %50 = tpu.transpose %49, [1, 0, 2] : vector<4x8x8xf32> -> vector<8x4x8xf32>
    %51 = vector.shape_cast %50 : vector<8x4x8xf32> to vector<8x32xf32>
    %52 = arith.truncf %51 : vector<8x32xf32> to vector<8x32xbf16>
    %c0_27 = arith.constant 0 : index
    %c0_28 = arith.constant 0 : index
    %53 = vector.load %arg11[%c0_27, %c0_28] : memref<32x32xbf16, #tpu.memory_space<vmem>>, vector<32x32xbf16>
    %cst_29 = arith.constant dense<0.000000e+00> : vector<8x32xf32>
    %54 = tpu.matmul %52, %53, %cst_29 {dimension_numbers = #tpu.dot_dimension_numbers<[1], [0], [0], [1], [0, 0, 1, 1], [], []>} : vector<8x32xbf16>, vector<32x32xbf16>, vector<8x32xf32> -> vector<8x32xf32>
    %c0_30 = arith.constant 0 : index
    %c0_31 = arith.constant 0 : index
    %55 = vector.load %arg12[%c0_30, %c0_31] : memref<1x32xf32, #tpu.memory_space<vmem>>, vector<1x32xf32>
    %56 = vector.broadcast %55 : vector<1x32xf32> to vector<8x32xf32>
    %57 = arith.addf %54, %56 : vector<8x32xf32>
    %c0_32 = arith.constant 0 : index
    %c0_33 = arith.constant 0 : index
    %58 = vector.load %arg13[%c0_32, %c0_33] : memref<1x32xf32, #tpu.memory_space<vmem>>, vector<1x32xf32>
    %c0_34 = arith.constant 0 : index
    %c0_35 = arith.constant 0 : index
    %59 = vector.load %arg14[%c0_34, %c0_35] : memref<1x32xf32, #tpu.memory_space<vmem>>, vector<1x32xf32>
    %60 = arith.addf %1, %57 : vector<8x32xf32>
    %cst_36 = arith.constant dense<0.000000e+00> : vector<8xf32>
    %61 = vector.multi_reduction <add>, %60, %cst_36 [1] : vector<8x32xf32> to vector<8xf32>
    %62 = vector.shape_cast %61 : vector<8xf32> to vector<8x1xf32>
    %cst_37 = arith.constant 3.200000e+01 : f32
    %63 = vector.broadcast %cst_37 : f32 to vector<8x1xf32>
    %64 = arith.divf %62, %63 : vector<8x1xf32>
    %65 = vector.broadcast %64 : vector<8x1xf32> to vector<8x32xf32>
    %66 = arith.subf %60, %65 : vector<8x32xf32>
    %67 = arith.mulf %66, %66 : vector<8x32xf32>
    %cst_38 = arith.constant dense<0.000000e+00> : vector<8xf32>
    %68 = vector.multi_reduction <add>, %67, %cst_38 [1] : vector<8x32xf32> to vector<8xf32>
    %69 = vector.shape_cast %68 : vector<8xf32> to vector<8x1xf32>
    %cst_39 = arith.constant 3.200000e+01 : f32
    %70 = vector.broadcast %cst_39 : f32 to vector<8x1xf32>
    %71 = arith.divf %69, %70 : vector<8x1xf32>
    %72 = vector.broadcast %64 : vector<8x1xf32> to vector<8x32xf32>
    %73 = arith.subf %60, %72 : vector<8x32xf32>
    %cst_40 = arith.constant 9.99999974E-6 : f32
    %74 = vector.broadcast %cst_40 : f32 to vector<8x1xf32>
    %75 = arith.addf %71, %74 : vector<8x1xf32>
    %76 = math.rsqrt %75 : vector<8x1xf32>
    %77 = vector.broadcast %76 : vector<8x1xf32> to vector<8x32xf32>
    %78 = arith.mulf %73, %77 : vector<8x32xf32>
    %79 = vector.broadcast %58 : vector<1x32xf32> to vector<8x32xf32>
    %80 = arith.mulf %78, %79 : vector<8x32xf32>
    %81 = vector.broadcast %59 : vector<1x32xf32> to vector<8x32xf32>
    %82 = arith.addf %80, %81 : vector<8x32xf32>
    %83 = arith.truncf %82 : vector<8x32xf32> to vector<8x32xbf16>
    %c0_41 = arith.constant 0 : index
    %c0_42 = arith.constant 0 : index
    %84 = vector.load %arg15[%c0_41, %c0_42] : memref<32x64xbf16, #tpu.memory_space<vmem>>, vector<32x64xbf16>
    %cst_43 = arith.constant dense<0.000000e+00> : vector<8x64xf32>
    %85 = tpu.matmul %83, %84, %cst_43 {dimension_numbers = #tpu.dot_dimension_numbers<[1], [0], [0], [1], [0, 0, 1, 1], [], []>} : vector<8x32xbf16>, vector<32x64xbf16>, vector<8x64xf32> -> vector<8x64xf32>
    %c0_44 = arith.constant 0 : index
    %c0_45 = arith.constant 0 : index
    %86 = vector.load %arg16[%c0_44, %c0_45] : memref<1x64xf32, #tpu.memory_space<vmem>>, vector<1x64xf32>
    %87 = vector.broadcast %86 : vector<1x64xf32> to vector<8x64xf32>
    %88 = arith.addf %85, %87 : vector<8x64xf32>
    %cst_46 = arith.constant 0.000000e+00 : f32
    %89 = vector.broadcast %cst_46 : f32 to vector<8x64xf32>
    %90 = arith.maximumf %88, %89 : vector<8x64xf32>
    %91 = arith.truncf %90 : vector<8x64xf32> to vector<8x64xbf16>
    %c0_47 = arith.constant 0 : index
    %c0_48 = arith.constant 0 : index
    %92 = vector.load %arg17[%c0_47, %c0_48] : memref<64x32xbf16, #tpu.memory_space<vmem>>, vector<64x32xbf16>
    %cst_49 = arith.constant dense<0.000000e+00> : vector<8x32xf32>
    %93 = tpu.matmul %91, %92, %cst_49 {dimension_numbers = #tpu.dot_dimension_numbers<[1], [0], [0], [1], [0, 0, 1, 1], [], []>} : vector<8x64xbf16>, vector<64x32xbf16>, vector<8x32xf32> -> vector<8x32xf32>
    %c0_50 = arith.constant 0 : index
    %c0_51 = arith.constant 0 : index
    %94 = vector.load %arg18[%c0_50, %c0_51] : memref<1x32xf32, #tpu.memory_space<vmem>>, vector<1x32xf32>
    %95 = vector.broadcast %94 : vector<1x32xf32> to vector<8x32xf32>
    %96 = arith.addf %93, %95 : vector<8x32xf32>
    %97 = arith.addf %82, %96 : vector<8x32xf32>
    %cst_52 = arith.constant dense<0.000000e+00> : vector<8xf32>
    %98 = vector.multi_reduction <add>, %97, %cst_52 [1] : vector<8x32xf32> to vector<8xf32>
    %99 = vector.shape_cast %98 : vector<8xf32> to vector<8x1xf32>
    %cst_53 = arith.constant 3.200000e+01 : f32
    %100 = vector.broadcast %cst_53 : f32 to vector<8x1xf32>
    %101 = arith.divf %99, %100 : vector<8x1xf32>
    %102 = vector.broadcast %101 : vector<8x1xf32> to vector<8x32xf32>
    %103 = arith.subf %97, %102 : vector<8x32xf32>
    %104 = arith.mulf %103, %103 : vector<8x32xf32>
    %cst_54 = arith.constant dense<0.000000e+00> : vector<8xf32>
    %105 = vector.multi_reduction <add>, %104, %cst_54 [1] : vector<8x32xf32> to vector<8xf32>
    %106 = vector.shape_cast %105 : vector<8xf32> to vector<8x1xf32>
    %cst_55 = arith.constant 3.200000e+01 : f32
    %107 = vector.broadcast %cst_55 : f32 to vector<8x1xf32>
    %108 = arith.divf %106, %107 : vector<8x1xf32>
    %109 = vector.broadcast %101 : vector<8x1xf32> to vector<8x32xf32>
    %110 = arith.subf %97, %109 : vector<8x32xf32>
    %cst_56 = arith.constant 9.99999974E-6 : f32
    %111 = vector.broadcast %cst_56 : f32 to vector<8x1xf32>
    %112 = arith.addf %108, %111 : vector<8x1xf32>
    %113 = math.rsqrt %112 : vector<8x1xf32>
    %114 = vector.broadcast %113 : vector<8x1xf32> to vector<8x32xf32>
    %115 = arith.mulf %110, %114 : vector<8x32xf32>
    %116 = vector.broadcast %58 : vector<1x32xf32> to vector<8x32xf32>
    %117 = arith.mulf %115, %116 : vector<8x32xf32>
    %118 = vector.broadcast %59 : vector<1x32xf32> to vector<8x32xf32>
    %119 = arith.addf %117, %118 : vector<8x32xf32>
    %c0_57 = arith.constant 0 : index
    %c0_58 = arith.constant 0 : index
    %c0_59 = arith.constant 0 : index
    %120 = vector.load %arg19[%c0_57, %c0_58, %c0_59] : memref<1x8x32xf32, #tpu.memory_space<vmem>>, vector<1x8x32xf32>
    %121 = vector.shape_cast %120 : vector<1x8x32xf32> to vector<8x32xf32>
    %122 = vector.shape_cast %119 : vector<8x32xf32> to vector<1x8x32xf32>
    tpu.vector_store %arg19[%c0_57, %c0_58, %c0_59], %122 {strides = array<i32>} : memref<1x8x32xf32, #tpu.memory_space<vmem>>, vector<1x8x32xf32>,
    return
  }
  func.func @transform_0(%arg0: i32, %arg1: i32) -> (i32, i32, i32) {
    %c0_i32 = arith.constant 0 : i32
    %c0_i32_0 = arith.constant 0 : i32
    return %arg0, %arg1, %c0_i32 : i32, i32, i32
  }
  func.func @transform_1(%arg0: i32, %arg1: i32) -> (i32, i32, i32) {
    %c0_i32 = arith.constant 0 : i32
    %c0_i32_0 = arith.constant 0 : i32
    %c0_i32_1 = arith.constant 0 : i32
    return %arg0, %c0_i32, %c0_i32_0 : i32, i32, i32
  }
  func.func @transform_2(%arg0: i32, %arg1: i32) -> (i32, i32, i32) {
    %c0_i32 = arith.constant 0 : i32
    %c0_i32_0 = arith.constant 0 : i32
    %c0_i32_1 = arith.constant 0 : i32
    return %arg0, %c0_i32, %c0_i32_0 : i32, i32, i32
  }
  func.func @transform_3(%arg0: i32, %arg1: i32) -> (i32, i32) {
    %c0_i32 = arith.constant 0 : i32
    %c0_i32_0 = arith.constant 0 : i32
    %c0_i32_1 = arith.constant 0 : i32
    return %c0_i32, %c0_i32_0 : i32, i32
  }
  func.func @transform_4(%arg0: i32, %arg1: i32) -> (i32, i32) {
    %c0_i32 = arith.constant 0 : i32
    %c0_i32_0 = arith.constant 0 : i32
    %c0_i32_1 = arith.constant 0 : i32
    return %c0_i32, %c0_i32_0 : i32, i32
  }
  func.func @transform_5(%arg0: i32, %arg1: i32) -> (i32, i32) {
    %c0_i32 = arith.constant 0 : i32
    %c0_i32_0 = arith.constant 0 : i32
    %c0_i32_1 = arith.constant 0 : i32
    return %c0_i32, %c0_i32_0 : i32, i32
  }
  func.func @transform_6(%arg0: i32, %arg1: i32) -> (i32, i32) {
    %c0_i32 = arith.constant 0 : i32
    %c0_i32_0 = arith.constant 0 : i32
    %c0_i32_1 = arith.constant 0 : i32
    return %c0_i32, %c0_i32_0 : i32, i32
  }
  func.func @transform_7(%arg0: i32, %arg1: i32) -> (i32, i32) {
    %c0_i32 = arith.constant 0 : i32
    %c0_i32_0 = arith.constant 0 : i32
    %c0_i32_1 = arith.constant 0 : i32
    return %c0_i32, %c0_i32_0 : i32, i32
  }
  func.func @transform_8(%arg0: i32, %arg1: i32) -> (i32, i32) {
    %c0_i32 = arith.constant 0 : i32
    %c0_i32_0 = arith.constant 0 : i32
    %c0_i32_1 = arith.constant 0 : i32
    return %c0_i32, %c0_i32_0 : i32, i32
  }
  func.func @transform_9(%arg0: i32, %arg1: i32) -> (i32, i32) {
    %c0_i32 = arith.constant 0 : i32
    %c0_i32_0 = arith.constant 0 : i32
    %c0_i32_1 = arith.constant 0 : i32
    return %c0_i32, %c0_i32_0 : i32, i32
  }
  func.func @transform_10(%arg0: i32, %arg1: i32) -> (i32, i32) {
    %c0_i32 = arith.constant 0 : i32
    %c0_i32_0 = arith.constant 0 : i32
    %c0_i32_1 = arith.constant 0 : i32
    return %c0_i32, %c0_i32_0 : i32, i32
  }
  func.func @transform_11(%arg0: i32, %arg1: i32) -> (i32, i32) {
    %c0_i32 = arith.constant 0 : i32
    %c0_i32_0 = arith.constant 0 : i32
    %c0_i32_1 = arith.constant 0 : i32
    return %c0_i32, %c0_i32_0 : i32, i32
  }
  func.func @transform_12(%arg0: i32, %arg1: i32) -> (i32, i32) {
    %c0_i32 = arith.constant 0 : i32
    %c0_i32_0 = arith.constant 0 : i32
    %c0_i32_1 = arith.constant 0 : i32
    return %c0_i32, %c0_i32_0 : i32, i32
  }
  func.func @transform_13(%arg0: i32, %arg1: i32) -> (i32, i32) {
    %c0_i32 = arith.constant 0 : i32
    %c0_i32_0 = arith.constant 0 : i32
    %c0_i32_1 = arith.constant 0 : i32
    return %c0_i32, %c0_i32_0 : i32, i32
  }
  func.func @transform_14(%arg0: i32, %arg1: i32) -> (i32, i32) {
    %c0_i32 = arith.constant 0 : i32
    %c0_i32_0 = arith.constant 0 : i32
    %c0_i32_1 = arith.constant 0 : i32
    return %c0_i32, %c0_i32_0 : i32, i32
  }
  func.func @transform_15(%arg0: i32, %arg1: i32) -> (i32, i32) {
    %c0_i32 = arith.constant 0 : i32
    %c0_i32_0 = arith.constant 0 : i32
    %c0_i32_1 = arith.constant 0 : i32
    return %c0_i32, %c0_i32_0 : i32, i32
  }
  func.func @transform_16(%arg0: i32, %arg1: i32) -> (i32, i32) {
    %c0_i32 = arith.constant 0 : i32
    %c0_i32_0 = arith.constant 0 : i32
    %c0_i32_1 = arith.constant 0 : i32
    return %c0_i32, %c0_i32_0 : i32, i32
  }
  func.func @transform_17(%arg0: i32, %arg1: i32) -> (i32, i32, i32) {
    %c0_i32 = arith.constant 0 : i32
    %c0_i32_0 = arith.constant 0 : i32
    return %arg0, %arg1, %c0_i32 : i32, i32, i32
  }
}

</mosaic_0001>

<bundles_post_ra>
// kernel: tpu_custom_call.1
= control target key start
LH: loop header
LB: loop body
LE: loop exit
PB: predicated region body
PF: predicated region fallthrough
CT: control target
= control target key end

     0   :  { %s3819_s0 = inlined_call_operand.vmem [shape: f32[2,8,32], index: 0, kind: input, shape index: {}]   ;;  %s3820_s1 = inlined_call_operand.vmem [shape: f32[2,8,32], index: 1, kind: input, shape index: {}]   ;;  %s3821_s2 = inlined_call_operand.hbm [shape: f32[2,1,8], index: 2, kind: input, shape index: {}]   ;;  %s3822_s3 = inlined_call_operand.vmem [shape: bf16[32,32], index: 3, kind: input, shape index: {}]   ;;  %s3823_s4 = inlined_call_operand.vmem [shape: f32[1,32], index: 4, kind: input, shape index: {}]   ;;  %s3824_s5 = inlined_call_operand.hbm [shape: bf16[32,32], index: 5, kind: input, shape index: {}]   ;;  %s3825_s6 = inlined_call_operand.hbm [shape: f32[1,32], index: 6, kind: input, shape index: {}]   ;;  %s3826_s7 = inlined_call_operand.hbm [shape: bf16[32,32], index: 7, kind: input, shape index: {}]   ;;  %s3827_s8 = inlined_call_operand.hbm [shape: f32[1,32], index: 8, kind: input, shape index: {}]   ;;  %s3828_s9 = inlined_call_operand.vmem [shape: bf16[32,32], index: 9, kind: input, shape index: {}]   ;;  %s3829_s10 = inlined_call_operand.hbm [shape: f32[1,32], index: 10, kind: input, shape index: {}]   ;;  %s3830_s11 = inlined_call_operand.hbm [shape: f32[1,32], index: 11, kind: input, shape index: {}]   ;;  %s3831_s12 = inlined_call_operand.hbm [shape: f32[1,32], index: 12, kind: input, shape index: {}]   ;;  %s3832_s13 = inlined_call_operand.vmem [shape: bf16[32,64], index: 13, kind: input, shape index: {}]   ;;  %s3833_s14 = inlined_call_operand.vmem [shape: f32[1,64], index: 14, kind: input, shape index: {}]   ;;  %s3834_s15 = inlined_call_operand.vmem [shape: bf16[64,32], index: 15, kind: input, shape index: {}]   ;;  %s3835_s16 = inlined_call_operand.vmem [shape: f32[1,32], index: 16, kind: input, shape index: {}]   ;;  %s3836_s17 = inlined_call_operand.hbm [shape: f32[2,8,32], index: 17, kind: output, shape index: {}]  }
   0x1   :  { %3850 = sst [smem:[#allocation24_spill]] %s3819_s0 }
   0x2   :  { %3851 = sst [smem:[#allocation25_spill]] %s3820_s1 }
   0x3   :  { %3852 = sst [smem:[#allocation26_spill]] %s3821_s2 }
   0x4   :  { %3853 = sst [smem:[#allocation27_spill]] %s3822_s3 }
   0x5   :  { %3854 = sst [smem:[#allocation28_spill]] %s3823_s4 }
   0x6   :  { %3855 = sst [smem:[#allocation29_spill]] %s3828_s9 }
   0x7   :  { %3856 = sst [smem:[#allocation30_spill]] %s3832_s13 }
   0x8   :  { %3857 = sst [smem:[#allocation31_spill]] %s3833_s14 }
   0x9   :  { %3858 = sst [smem:[#allocation32_spill]] %s3834_s15 }
   0xa   :  { %3859 = sst [smem:[#allocation33_spill]] %s3835_s16 }
   0xb   :  { %3860 = sst [smem:[#allocation34_spill]] %s3836_s17 }
   0xc   :  { %22 = vsyncpa [#allocation3], 0 }
   0xd   :  { %24 = vsyncpa [#allocation3 + $0x1], 0 }
   0xe   :  { %25 = vsyncpa [#allocation6], 0 }
   0xf   :  { %26 = vsyncpa [#allocation9], 0 }
  0x10   :  { %27 = vsyncpa [#allocation12], 0 }
  0x11   :  { %28 = vsyncpa [#allocation15], 0 }
  0x12   :  { %29 = vsyncpa [#allocation4], 0 }
  0x13   :  { %31 = vsyncpa [#allocation4 + $0x1], 0  ;;  %s3229_s24 = smov 0   ;;  %s3231_s25 = smov 0  }
  0x14   :  { %s3233_s26 = smov 0   ;;  %s3235_s27 = smov 0  }
  0x15   :  { %s3237_s28 = smov 0   ;;  %s3239_s29 = smov 0  }
  0x16 LB: > { %3861 = sst [smem:[#allocation23_spill]] %s3108_s27  ;;  %s3837_s0 = sadd.s32 4294967295, %s3116_s29   ;;  %s3116_s29 = sphi %s3239_s29, %s37_s29   ;;  %s3112_s28 = sphi %s3237_s28, %s3896_s28   ;;  %s3108_s27 = sphi %s3235_s27, %s3895_s27   ;;  %s3104_s26 = sphi %s3233_s26, %s3894_s26   ;;  %s3100_s25 = sphi %s3231_s25, %s3893_s25   ;;  %s3096_s24 = sphi %s3229_s24, %s3892_s24  }
  0x17   : > { %p2407_p0 = scmp.ge.s32.totalorder %s3116_s29, 1  ;;  %p3263_p1 = scmp.eq.s32.totalorder %s3837_s0, 0 }
  0x18   : > { %p456_p2 = scmp.lt.s32.totalorder %s3116_s29, 3  ;;  %s3118_s19 = smov [#allocation5]  }
  0x19   : > { %s3862_s30 = scalar_select %p3263_p1, 1, 0 }
  0x1a   : > { %p3268_p3 = pnand %p2407_p0, %p456_p2  ;;  %s474_s1 = sshll.u32 %s3118_s19, 4  ;;  %s3272_s1 = int_to_ptr.vmem [resolvable:$true] %s474_s1 }
  0x1b   : > { %s3119_s21 = smov [#allocation8]   ;;  %s3120_s23 = smov [#allocation11]  }
  0x1c   : > { %s3863_s18 = scalar_select %p3268_p3, 1, 0 }
  0x1d   : > { %p2645_p4 = pneg %p3268_p3  ;;  %s498_s22 = sshll.u32 %s3119_s21, 4  ;;  %s3283_s22 = int_to_ptr.vmem [resolvable:$true] %s498_s22 }
  0x1e   : > { %s3285_s0 = sshll.u32 %s3120_s23, 4  ;;  %s2792_s16 = scalar_lea.hbm %s3824_s5, 256  ;;  %s527_s0 = int_to_ptr.vmem [resolvable:$true] %s3285_s0 }
  0x1f   : > { %p3279_p6 = pnand %p2645_p4, %p3263_p1  ;;  %p2793_p7 = scmp.ne.s32.totalorder %s3824_s5, %s2792_s16 }
  0x20   : > { %p2799_p11 = scmp.lt.u32.totalorder %s2792_s16, %s3824_s5 }
  0x21   : > { %p3295_p8 = pneg %p3279_p6 }
  0x23   : > { %p2795_p9 = pnand %p3295_p8, %p2793_p7 }
  0x25   : > { %p2796_p10 = pneg %p2795_p9 }
  0x27   : > { %p2801_p12 = pnand %p2799_p11, %p2796_p10 }
  0x29   : > { %2804 = shalt.err (!%p2801_p12)
}
  0x2a   : > { %s2805_s14 = scalar_lea.vmem %s3272_s1, 256  ;;  %p2813_p4 = scmp.lt.s32.totalorder %s3272_s1, %s3272_s1 }
  0x2b   : > { %p2806_p13 = scmp.ne.s32.totalorder %s3272_s1, %s2805_s14  ;;  %p2814_p5 = scmp.lt.s32.totalorder %s2805_s14, %s2805_s14 }
  0x2d   : > { %p2808_p0 = pnand %p2806_p13, %p3295_p8  ;;  %p2815_p7 = por %p2814_p5, %p2813_p4 }
  0x2f   : > { %p2809_p2 = pneg %p2808_p0 }
  0x31   : > { %p2816_p9 = pnand %p2815_p7, %p2809_p2 }
  0x33   : > { %2819 = shalt.err (!%p2816_p9)
}
  0x34   : > { %s3121_s15 = smov 64   ;;  %s3122_s16 = smov 4  }
  0x35   : > { %2648 = dma.hbm_to_vmem [thread:$0]  (!%p3279_p6), %s3824_s5, 256, %s3272_s1, [#allocation6], %s3121_s15, %s3121_s15, %s3122_s16  }
  0x36   : > { %s2820_s9 = scalar_lea.hbm %s3826_s7, 256 }
  0x37   : > { %p2821_p5 = scmp.ne.s32.totalorder %s3826_s7, %s2820_s9  ;;  %p2827_p12 = scmp.lt.u32.totalorder %s2820_s9, %s3826_s7 }
  0x39   : > { %p2823_p10 = pnand %p2821_p5, %p3295_p8 }
  0x3b   : > { %p2824_p11 = pneg %p2823_p10 }
  0x3d   : > { %p2829_p13 = pnand %p2827_p12, %p2824_p11 }
  0x3f   : > { %2832 = shalt.err (!%p2829_p13)
}
  0x40   : > { %s2833_s1 = scalar_lea.vmem %s3283_s22, 256  ;;  %p2841_p7 = scmp.lt.s32.totalorder %s3283_s22, %s3283_s22 }
  0x41   : > { %p2834_p0 = scmp.ne.s32.totalorder %s3283_s22, %s2833_s1  ;;  %p2842_p9 = scmp.lt.s32.totalorder %s2833_s1, %s2833_s1 }
  0x43   : > { %p2836_p2 = pnand %p2834_p0, %p3295_p8  ;;  %p2843_p5 = por %p2842_p9, %p2841_p7 }
  0x45   : > { %p2837_p4 = pneg %p2836_p2 }
  0x47   : > { %p2844_p10 = pnand %p2843_p5, %p2837_p4 }
  0x49   : > { %2847 = shalt.err (!%p2844_p10)
}
  0x4a   : > { %2654 = dma.hbm_to_vmem [thread:$0]  (!%p3279_p6), %s3826_s7, 256, %s3283_s22, [#allocation9], %s3121_s15, %s3121_s15, %s3122_s16  }
  0x4b   : > { %s2848_s17 = scalar_lea.hbm %s3829_s10, 16 }
  0x4c   : > { %p2849_p11 = scmp.ne.s32.totalorder %s3829_s10, %s2848_s17  ;;  %p2855_p0 = scmp.lt.u32.totalorder %s2848_s17, %s3829_s10 }
  0x4e   : > { %p2851_p12 = pnand %p2849_p11, %p3295_p8 }
  0x50   : > { %p2852_p13 = pneg %p2851_p12 }
  0x52   : > { %p2857_p2 = pnand %p2855_p0, %p2852_p13 }
  0x54   : > { %2860 = shalt.err (!%p2857_p2)
}
  0x55   : > { %s2861_s1 = scalar_lea.vmem %s527_s0, 16  ;;  %s2868_s22 = scalar_lea.vmem %s527_s0, 32 }
  0x56   : > { %p2862_p4 = scmp.ne.s32.totalorder %s527_s0, %s2861_s1  ;;  %p2869_p5 = scmp.lt.s32.totalorder %s527_s0, %s527_s0 }
  0x57   : > { %p2870_p10 = scmp.lt.s32.totalorder %s2868_s22, %s2861_s1 }
  0x58   : > { %p2864_p7 = pnand %p2862_p4, %p3295_p8 }
  0x59   : > { %p2871_p3 = por %p2870_p10, %p2869_p5 }
  0x5a   : > { %p2865_p9 = pneg %p2864_p7 }
  0x5c   : > { %p2872_p1 = pnand %p2871_p3, %p2865_p9 }
  0x5e   : > { %2875 = shalt.err (!%p2872_p1)
}
  0x5f   : > { %2660 = dma.hbm_to_vmem [thread:$0]  (!%p3279_p6), %s3829_s10, 16, %s527_s0, [#allocation12]  }
  0x60   : > { %s3123_s3 = smov [#allocation7]   ;;  %s3124_s9 = smov [#allocation10]  }
  0x61   : > { %s488_s4 = sshll.u32 %s3123_s3, 4  ;;  %s512_s27 = sshll.u32 %s3124_s9, 4  ;;  %s489_s4 = int_to_ptr.vmem [resolvable:$true] %s488_s4  ;;  %s513_s27 = int_to_ptr.vmem [resolvable:$true] %s512_s27 }
  0x62   : > { %s2876_s21 = scalar_lea.hbm %s3825_s6, 16 }
  0x63   : > { %p2877_p1 = scmp.ne.s32.totalorder %s3825_s6, %s2876_s21  ;;  %p2883_p12 = scmp.lt.u32.totalorder %s2876_s21, %s3825_s6 }
  0x65   : > { %p2879_p3 = pnand %p2877_p1, %p3295_p8 }
  0x67   : > { %p2880_p11 = pneg %p2879_p3 }
  0x69   : > { %p2885_p13 = pnand %p2883_p12, %p2880_p11 }
  0x6b   : > { %2888 = shalt.err (!%p2885_p13)
}
  0x6c   : > { %s2889_s0 = scalar_lea.vmem %s489_s4, 16  ;;  %s2896_s15 = scalar_lea.vmem %s489_s4, 32 }
  0x6d   : > { %p2890_p0 = scmp.ne.s32.totalorder %s489_s4, %s2889_s0  ;;  %p2897_p7 = scmp.lt.s32.totalorder %s489_s4, %s489_s4 }
  0x6e   : > { %p2898_p9 = scmp.lt.s32.totalorder %s2896_s15, %s2889_s0 }
  0x6f   : > { %p2892_p2 = pnand %p2890_p0, %p3295_p8 }
  0x70   : > { %p2899_p5 = por %p2898_p9, %p2897_p7 }
  0x71   : > { %p2893_p4 = pneg %p2892_p2 }
  0x73   : > { %p2900_p10 = pnand %p2899_p5, %p2893_p4 }
  0x75   : > { %2903 = shalt.err (!%p2900_p10)
}
  0x76   : > { %2651 = dma.hbm_to_vmem [thread:$0]  (!%p3279_p6), %s3825_s6, 16, %s489_s4, [#allocation6]  }
  0x77   : > { %s2904_s19 = scalar_lea.hbm %s3827_s8, 16 }
  0x78   : > { %p2905_p1 = scmp.ne.s32.totalorder %s3827_s8, %s2904_s19  ;;  %p2911_p12 = scmp.lt.u32.totalorder %s2904_s19, %s3827_s8 }
  0x7a   : > { %p2907_p3 = pnand %p2905_p1, %p3295_p8 }
  0x7c   : > { %p2908_p11 = pneg %p2907_p3 }
  0x7e   : > { %p2913_p13 = pnand %p2911_p12, %p2908_p11 }
  0x80   : > { %2916 = shalt.err (!%p2913_p13)
}
  0x81   : > { %s2917_s22 = scalar_lea.vmem %s513_s27, 16  ;;  %s2924_s4 = scalar_lea.vmem %s513_s27, 32 }
  0x82   : > { %p2918_p0 = scmp.ne.s32.totalorder %s513_s27, %s2917_s22  ;;  %p2925_p7 = scmp.lt.s32.totalorder %s513_s27, %s513_s27 }
  0x83   : > { %p2926_p9 = scmp.lt.s32.totalorder %s2924_s4, %s2917_s22 }
  0x84   : > { %p2920_p2 = pnand %p2918_p0, %p3295_p8 }
  0x85   : > { %p2927_p5 = por %p2926_p9, %p2925_p7 }
  0x86   : > { %p2921_p4 = pneg %p2920_p2 }
  0x88   : > { %p2928_p10 = pnand %p2927_p5, %p2921_p4 }
  0x8a   : > { %2931 = shalt.err (!%p2928_p10)
}
  0x8b   : > { %2657 = dma.hbm_to_vmem [thread:$0]  (!%p3279_p6), %s3827_s8, 16, %s513_s27, [#allocation9]  }
  0x8c   : > { %s3125_s16 = smov [#allocation13]   ;;  %s3126_s9 = smov [#allocation14]  }
  0x8d   : > { %s537_s3 = sshll.u32 %s3125_s16, 4  ;;  %s548_s17 = sshll.u32 %s3126_s9, 4  ;;  %s538_s3 = int_to_ptr.vmem [resolvable:$true] %s537_s3  ;;  %s549_s17 = int_to_ptr.vmem [resolvable:$true] %s548_s17 }
  0x8e   : > { %s2932_s23 = scalar_lea.hbm %s3830_s11, 16 }
  0x8f   : > { %p2933_p1 = scmp.ne.s32.totalorder %s3830_s11, %s2932_s23  ;;  %p2939_p12 = scmp.lt.u32.totalorder %s2932_s23, %s3830_s11 }
  0x91   : > { %p2935_p3 = pnand %p2933_p1, %p3295_p8 }
  0x93   : > { %p2936_p11 = pneg %p2935_p3 }
  0x95   : > { %p2941_p13 = pnand %p2939_p12, %p2936_p11 }
  0x97   : > { %2944 = shalt.err (!%p2941_p13)
}
  0x98   : > { %s2945_s27 = scalar_lea.vmem %s538_s3, 16  ;;  %s2952_s0 = scalar_lea.vmem %s538_s3, 32 }
  0x99   : > { %p2946_p0 = scmp.ne.s32.totalorder %s538_s3, %s2945_s27  ;;  %p2953_p7 = scmp.lt.s32.totalorder %s538_s3, %s538_s3 }
  0x9a   : > { %p2954_p9 = scmp.lt.s32.totalorder %s2952_s0, %s2945_s27 }
  0x9b   : > { %p2948_p2 = pnand %p2946_p0, %p3295_p8 }
  0x9c   : > { %p2955_p5 = por %p2954_p9, %p2953_p7 }
  0x9d   : > { %p2949_p4 = pneg %p2948_p2 }
  0x9f   : > { %p2956_p10 = pnand %p2955_p5, %p2949_p4 }
  0xa1   : > { %2959 = shalt.err (!%p2956_p10)
}
  0xa2   : > { %2663 = dma.hbm_to_vmem [thread:$0]  (!%p3279_p6), %s3830_s11, 16, %s538_s3, [#allocation12]  }
  0xa3   : > { %s2960_s21 = scalar_lea.hbm %s3831_s12, 16 }
  0xa4   : > { %p2961_p1 = scmp.ne.s32.totalorder %s3831_s12, %s2960_s21  ;;  %p2967_p12 = scmp.lt.u32.totalorder %s2960_s21, %s3831_s12 }
  0xa6   : > { %p2963_p3 = pnand %p2961_p1, %p3295_p8 }
  0xa8   : > { %p2964_p11 = pneg %p2963_p3 }
  0xaa   : > { %p2969_p13 = pnand %p2967_p12, %p2964_p11 }
  0xac   : > { %2972 = shalt.err (!%p2969_p13)
}
  0xad   : > { %s2973_s4 = scalar_lea.vmem %s549_s17, 16  ;;  %s2980_s3 = scalar_lea.vmem %s549_s17, 32 }
  0xae   : > { %p2974_p0 = scmp.ne.s32.totalorder %s549_s17, %s2973_s4  ;;  %p2981_p7 = scmp.lt.s32.totalorder %s549_s17, %s549_s17 }
  0xaf   : > { %p2982_p9 = scmp.lt.s32.totalorder %s2980_s3, %s2973_s4 }
  0xb0   : > { %p2976_p2 = pnand %p2974_p0, %p3295_p8 }
  0xb1   : > { %p2983_p5 = por %p2982_p9, %p2981_p7 }
  0xb2   : > { %p2977_p4 = pneg %p2976_p2 }
  0xb4   : > { %p2984_p10 = pnand %p2983_p5, %p2977_p4 }
  0xb6   : > { %2987 = shalt.err (!%p2984_p10)
}
  0xb7   : > { %2666 = dma.hbm_to_vmem [thread:$0]  (!%p3279_p6), %s3831_s12, 16, %s549_s17, [#allocation15]  }
  0xb8   : > { %s2406_s13 = sadd.s32 4294967294, %s3116_s29   ;;  %s49_s15 = sadd.s32 1, %s3112_s28 }
  0xb9   : > { %s110_s20 = sadd.s32 1, %s3104_s26  ;;  %p51_p8 = scmp.ge.s32.totalorder %s49_s15, 2 }
  0xba   : > { %p117_p1 = scmp.ne.s32.totalorder %s3104_s26, %s3100_s25  ;;  %p118_p3 = scmp.eq.s32.totalorder %s3116_s29, 0 }
  0xbb   : > { %p123_p11 = scmp.ne.s32.totalorder %s3100_s25, %s3096_s24  ;;  %s3898_s15 = smov (%p51_p8, %s49_s15), 0 }
  0xbc   : > { %p3440_p12 = por %p118_p3, %p117_p1  ;;  %p3867_p13 = scmp.ne.s32.totalorder %s3862_s30, 0 }
  0xbd   : > { %s107_s9 = ssub.s32 %s3112_s28, %s3898_s15  ;;  %s3869_s19 = sadd.s32 4294967295, %s3116_s29  }
  0xbe   : > { %p3446_p6 = por %p3867_p13, %p123_p11  ;;  %p443_p0 = scmp.eq.s32.totalorder %s3869_s19, 1 }
  0xbf   : > { %p108_p2 = scmp.eq.s32.totalorder %s107_s9, 0  ;;  %p449_p4 = scmp.eq.s32.totalorder %s2406_s13, 1 }
  0xc0   : > { %p3454_p7 = por %p443_p0, %p117_p1  ;;  %p2682_p9 = scmp.lt.s32.totalorder %s3116_s29, 2 }
  0xc1   : > { %s3460_s23 = scalar_select %p108_p2, %s3104_s26, %s110_s20  }
  0xc2   : > { %s3870_s21 = scalar_select %p3454_p7, 1, 0 }
  0xc3   : > { %p3462_p5 = por %p449_p4, %p123_p11  ;;  %s588_s1 = sand.u32 1, %s3104_s26  }
  0xc4   : > { %s2416_s22 = sshll.u32 %s3112_s28, 4  ;;  %s591_s4 = scalar_lea.vmem [#allocation2], %s588_s1 }
  0xc5   : > { %s3871_s14 = scalar_select %p3462_p5, 1, 0 }
  0xc6   : > { %s598_s3 = sshll.u32 %s591_s4, 4  ;;  %s3872_s2 = sld [smem:[#allocation26_spill]]  ;;  %s3473_s3 = int_to_ptr.vmem [resolvable:$true] %s598_s3 }
  0xc7   : > { %p3477_p10 = pnand %p2682_p9, %p3440_p12  ;;  %s589_s20 = scalar_lea.sflag [#allocation3], %s588_s1 }
  0xc9   : > { %p2990_p1 = pneg %p3477_p10 }
  0xcc   : > { %s3471_s9 = scalar_lea.hbm %s3872_s2, %s2416_s22  ;;  %s2993_s27 = scalar_lea.hbm %s3872_s2, 32 }
  0xcd   : > { %s2988_s19 = scalar_lea.hbm %s3471_s9, 16  ;;  %p2994_p12 = scmp.lt.u32.totalorder %s3471_s9, %s3872_s2 }
  0xce   : > { %p2989_p8 = scmp.ne.s32.totalorder %s3471_s9, %s2988_s19  ;;  %p2995_p13 = scmp.lt.u32.totalorder %s2993_s27, %s2988_s19 }
  0xcf   : > { %p2997_p2 = scmp.lt.u32.totalorder %s2988_s19, %s3471_s9 }
  0xd0   : > { %p2991_p3 = pnand %p2990_p1, %p2989_p8  ;;  %p2996_p0 = por %p2995_p13, %p2994_p12 }
  0xd2   : > { %p2992_p11 = pneg %p2991_p3  ;;  %p2998_p4 = por %p2997_p2, %p2996_p0 }
  0xd4   : > { %p2999_p9 = pnand %p2998_p4, %p2992_p11 }
  0xd6   : > { %3002 = shalt.err (!%p2999_p9)
}
  0xd7   : > { %s3003_s1 = scalar_lea.vmem %s3473_s3, 16  ;;  %s3127_s22 = smov [#allocation2]  }
  0xd8   : > { %p3004_p8 = scmp.ne.s32.totalorder %s3473_s3, %s3003_s1  ;;  %s3008_s4 = sshll.u32 %s3127_s22, 4  ;;  %s3009_s4 = int_to_ptr.vmem [resolvable:$false] %s3008_s4 }
  0xd9   : > { %s3010_s16 = scalar_lea.vmem %s3009_s4, 32  ;;  %p3011_p7 = scmp.lt.s32.totalorder %s3473_s3, %s3009_s4 }
  0xda   : > { %p3006_p3 = pnand %p3004_p8, %p2990_p1  ;;  %p3012_p12 = scmp.lt.s32.totalorder %s3010_s16, %s3003_s1 }
  0xdc   : > { %p3007_p5 = pneg %p3006_p3  ;;  %p3013_p13 = por %p3012_p12, %p3011_p7 }
  0xde   : > { %p3014_p0 = pnand %p3013_p13, %p3007_p5 }
  0xe0   : > { %3017 = shalt.err (!%p3014_p0)
}
  0xe1   : > { %2670 = dma.hbm_to_vmem [thread:$0]  (!%p3477_p10), %s3471_s9, 16, %s3473_s3, %s589_s20  }
  0xe2   : > { %p3874_p11 = scmp.ne.s32.totalorder %s3863_s18, 0 }
  0xe3   : > { %s3509_s19 = sand.u32 (!%p3874_p11), 1, %s3100_s25  }
  0xe4   : > { %607 = sbr.rel (%p3874_p11) target bundleno = 2828 (0xb0c), region = 88  ;;  %s610_s27 = scalar_lea.sflag (!%p3874_p11), [#allocation3], %s3509_s19 }
  0xeb   : > { %3071 = dma.done.wait (%p3446_p6), %s610_s27, 16  }
  0xec   : > { %3073 = vsyncadd (%p3446_p6), %s610_s27, 4294967280  ;;  %p3875_p7 = scmp.ne.s32.totalorder %s3862_s30, 0 }
  0xee   : > { %3075 = dma.done.wait (%p3875_p7), [#allocation6], 272  }
  0xef   : > { %3077 = vsyncadd (%p3875_p7), [#allocation6], 4294967024 }
  0xf0   : > { %3079 = dma.done.wait (%p3875_p7), [#allocation9], 272  }
  0xf1   : > { %3081 = vsyncadd (%p3875_p7), [#allocation9], 4294967024 }
  0xf2   : > { %3083 = dma.done.wait (%p3875_p7), [#allocation12], 32  }
  0xf3   : > { %3085 = vsyncadd (%p3875_p7), [#allocation12], 4294967264 }
  0xf4   : > { %3087 = dma.done.wait (%p3875_p7), [#allocation15], 16  }
  0xf5   : > { %3089 = vsyncadd (%p3875_p7), [#allocation15], 4294967280  ;;  %s3876_s18 = sld [smem:[#allocation23_spill]]  ;;  %v3128_v0 = vmov 0.0   ;;  %vm3129_vm0 = vmmov 0   ;;  %v2758_v1 = vld [vmem:[#allocation5] sm:$0xff]   ;;  %v928_v25 = vlaneseq }
  0xf6   : > { %2521 = vmatprep.subr.bf16.mxu1 %v3128_v0  ;;  %2513 = vmatprep.subr.bf16.mxu0 %v3128_v0  ;;  %s3877_s13 = sld [smem:[#allocation25_spill]]  ;;  %s3878_s4 = sld [smem:[#allocation27_spill]]  ;;  %v2760_v3 = vld [vmem:[#allocation5 + $0x8] sm:$0xff]   ;;  %vm740_vm1 = vcmask 261120   ;;  %v2432_v9 = vld [vmem:[#allocation7] ss:$0 sm:$0xff] }
  0xf7   : > { %2525 = vmatprep.mubr.msk.bf16.mxu1 %vm3129_vm0, %v3128_v0  ;;  %2517 = vmatprep.mubr.msk.bf16.mxu0 %vm3129_vm0, %v3128_v0  ;;  %s3879_s0 = sld [smem:[#allocation24_spill]]  ;;  %v2762_v15 = vld [vmem:[#allocation8] sm:$0xff]   ;;  %s3130_s9 = smov 104   ;;  %v2763_v22 = vld [vmem:[#allocation8 + $0x8] sm:$0xff]   ;;  %v3133_v23 = vmov 1983009808  }
  0xf8   : > { %2522 = vmatpush3.bf16.msra.mxu1 %v2758_v1  ;;  %v926_v24 = vunpack.c.l.s4 %v3133_v23  ;;  %v3134_v26 = vmov 1934713408   ;;  %v929_v29 = vshrl.u32 %v928_v25, 7  ;;  %vm1370_vm2 = vcmask 64512   ;;  %s3881_s1 = scalar_lea.vmem [#allocation2], %s3509_s19  ;;  %s3882_s27 = sld [smem:[#allocation29_spill]] }
  0xf9   : > { %2523 = vmatprep.subr.bf16.mxu1 %v3128_v0  ;;  %v958_v27 = vunpack.c.l.s4 %v3134_v26  ;;  %vm1618_vm3 = vcmask 1043456   ;;  %vm1949_vm4 = vcmask 130048   ;;  %vm1951_vm5 = vcmask 195584   ;;  %s3886_s30 = sld [smem:[#allocation31_spill]]  ;;  %p3889_p10 = scmp.ne.s32.totalorder %s3870_s21, 0 }
  0xfa   : > { %v927_v28 = vunpack.c.0.s8 %v926_v24  ;;  %vm2159_vm6 = vcmask 523264  }
  0xfb   : > { %p701_p6 = scmp.lt.s32.totalorder %s3876_s18, 1  ;;  %v959_v32 = vunpack.c.0.s8 %v958_v27 }
  0xfc   : > { %v2759_v2 = vld [vmem:[%s3878_s4] sm:$0xff]   ;;  %v2761_v5 = vld [vmem:[%s3878_s4 + $0x8] sm:$0xff]   ;;  %2524 = vmatpush3.bf16.msra.mxu1 %v2760_v3  ;;  %v3581_v33 = vsub.s32 %v927_v28, %v929_v29 }
  0xfd   : > { %s702_s17 = scalar_select %p701_p6, %s3876_s18, 1  ;;  %2514 = vmatpush3.bf16.msra.mxu0 %v2759_v2  ;;  %2537 = vmatprep.subr.bf16.mxu1 %v3128_v0  ;;  %v3583_v40 = vsub.s32 %v959_v32, %v929_v29 }
  0xfe   : > { %2515 = vmatprep.subr.bf16.mxu0 %v3128_v0 }
  0xff   : > { %s2426_s3 = sshll.u32 %s702_s17, 3  ;;  %s3883_s17 = smov %s3882_s27 }
 0x100   : > { %s711_s20 = scalar_lea.vmem %s3877_s13, %s2426_s3  ;;  %s707_s2 = scalar_lea.vmem %s3879_s0, %s2426_s3 }
 0x101   : > { %v714_v4 = vld [vmem:[%s711_s20] sm:$0xff]  ;;  %2516 = vmatpush3.bf16.msra.mxu0 %v2761_v5  ;;  %s3880_s3 = sld [smem:[#allocation28_spill]]  ;;  %s3131_s13 = smov 120  }
 0x102   : > { %v3555_v6 = vld [vmem:[%s707_s2] sm:$0xff]  ;;  %v716_v7 = vpack.c.bf16 %v714_v4, %v714_v4  ;;  %2529 = vmatprep.subr.bf16.mxu0 %v3128_v0  ;;  %s3132_s20 = smov 112   ;;  %s3135_s0 = smov 16  }
 0x103   : > { %v715_v8 = vpack.c.bf16 %v3555_v6, %v3555_v6  ;;  %s3885_s2 = sld [smem:[#allocation32_spill]] }
 0x104   : > { %2526 = vmatmul.mubr.msk.bf16.vlgmr.msra.gmra.mrb[0].mxu1 %vm740_vm1, %v716_v7 }
 0x105   : > { %2518 = vmatmul.mubr.msk.bf16.vlgmr.msra.gmra.mrb[0].mxu0 %vm740_vm1, %v715_v8  ;;  %2539 = vmatprep.mubr.msk.bf16.mxu1 %vm3129_vm0, %v3128_v0 }
 0x106   : > { %2533 = vmatprep.mubr.msk.bf16.mxu0 %vm3129_vm0, %v3128_v0  ;;  %2530 = vmatpush3.bf16.msra.mxu0 %v2762_v15 }
 0x107   : > { %v2428_v11 = vld [vmem:[%s3880_s3] ss:$0 sm:$0xff]  ;;  %2531 = vmatprep.subr.bf16.mxu0 %v3128_v0  ;;  %s3136_s3 = smov 8  }
 0x10a   : > { %2532 = vmatpush3.bf16.msra.mxu0 %v2763_v22 }
 0x10b   : > { %2543 = vmatprep.subr.bf16.mxu0 %v3128_v0 }
 0x10d   : > { %2534 = vmatmul.mubr.msk.bf16.vlgmr.msra.gmra.mrb[4].mxu0 %vm740_vm1, %v716_v7 }
 0x10e   : > { %2545 = vmatprep.mubr.msk.bf16.mxu0 %vm3129_vm0, %v3128_v0 }
 0x1d7   : > { %v844_v10 = vpop.f32.mrb[0].mxu1 }
 0x1d8   : > { %v845_v12 = vadd.f32 %v2432_v9, %v844_v10  ;;  %v2527_v13 = vpop.f32.mrb[1].mxu1  ;;  %v778_v14 = vpop.f32.mrb[0].mxu0 }
 0x1d9   : > { %v847_v16 = vpop.f32.mrb[2].mxu1  ;;  %v2519_v17 = vpop.f32.mrb[1].mxu0  ;;  %v779_v19 = vadd.f32 %v2428_v11, %v778_v14 }
 0x1da   : > { %1070 = vrot.lane.b32.xlu1 %v845_v12, %s3130_s9  ;;  %1064 = vrot.lane.b32.xlu0 %v845_v12, %s3131_s13  ;;  %v2528_v18 = vpop.f32.mrb[3].mxu1  ;;  %v781_v20 = vpop.f32.mrb[2].mxu0 }
 0x1db   : > { %v2520_v21 = vpop.f32.mrb[3].mxu0 }
 0x1de   : > { %1067 = vrot.lane.b32.xlu0 %v845_v12, %s3132_s20  ;;  %914 = vrot.lane.b32.xlu1 %v779_v19, %s3131_s13 }
 0x1e2   : > { %917 = vrot.lane.b32.xlu0 %v779_v19, %s3132_s20  ;;  %920 = vrot.lane.b32.xlu1 %v779_v19, %s3130_s9 }
 0x24c   : > { %v1071_v30 = vpop.permute.xlu1 %1070  ;;  %v1065_v31 = vpop.permute.xlu0 %1064 }
 0x24d   : > { %v1089_v34 = vcombine.low %v1065_v31, %v1071_v30  ;;  %v1090_v35 = vcombine.high %v1065_v31, %v1071_v30 }
 0x24f   : > { %v1097_v41 = vrot.slane %v1089_v34, %v3581_v33  ;;  %v1104_v42 = vrot.slane %v1090_v35, %v3581_v33 }
 0x250   : > { %v1068_v36 = vpop.permute.xlu0 %1067  ;;  %v915_v37 = vpop.permute.xlu1 %914 }
 0x251   : > { %v1073_v38 = vcombine.low %v845_v12, %v1068_v36  ;;  %v1074_v39 = vcombine.high %v845_v12, %v1068_v36 }
 0x253   : > { %v1081_v43 = vrot.slane %v1073_v38, %v3581_v33  ;;  %v1088_v44 = vrot.slane %v1074_v39, %v3581_v33 }
 0x254   : > { %v918_v45 = vpop.permute.xlu0 %917  ;;  %v921_v46 = vpop.permute.xlu1 %920 }
 0x255   : > { %v1105_v47 = vcombine.low %v1081_v43, %v1097_v41  ;;  %v1106_v48 = vcombine.high %v1081_v43, %v1097_v41  ;;  %v1121_v49 = vcombine.low %v1088_v44, %v1104_v42  ;;  %v1122_v50 = vcombine.high %v1088_v44, %v1104_v42 }
 0x256   : > { %v923_v51 = vcombine.low %v779_v19, %v918_v45  ;;  %v924_v52 = vcombine.high %v779_v19, %v918_v45  ;;  %v939_v53 = vcombine.low %v915_v37, %v921_v46  ;;  %v940_v54 = vcombine.high %v915_v37, %v921_v46 }
 0x257   : > { %v1113_v55 = vrot.slane %v1105_v47, %v3583_v40  ;;  %v1120_v56 = vrot.slane %v1106_v48, %v3583_v40  ;;  %v1129_v57 = vrot.slane %v1121_v49, %v3583_v40  ;;  %v1136_v58 = vrot.slane %v1122_v50, %v3583_v40 }
 0x258   : > { %v931_v59 = vrot.slane %v923_v51, %v3581_v33  ;;  %v938_v60 = vrot.slane %v924_v52, %v3581_v33  ;;  %v947_v61 = vrot.slane %v939_v53, %v3581_v33  ;;  %v954_v62 = vrot.slane %v940_v54, %v3581_v33 }
 0x259   : > { %v1141_v63 = vcombine.low %v1113_v55, %v1120_v56  ;;  %v2442_v1 = vcombine.high %v1113_v55, %v1120_v56  ;;  %v1157_v2 = vcombine.low %v1129_v57, %v1136_v58  ;;  %v2443_v3 = vcombine.high %v1129_v57, %v1136_v58 }
 0x25a   : > { %v955_v4 = vcombine.low %v931_v59, %v947_v61  ;;  %v956_v5 = vcombine.high %v931_v59, %v947_v61  ;;  %v971_v7 = vcombine.low %v938_v60, %v954_v62  ;;  %v972_v8 = vcombine.high %v938_v60, %v954_v62 }
 0x25b   : > { %v1148_v9 = vrot.slane %v1141_v63, %v3581_v33  ;;  %v1156_v10 = vrot.slane %v2442_v1, %v3581_v33  ;;  %v1164_v11 = vrot.slane %v1157_v2, %v3581_v33  ;;  %v1172_v12 = vrot.slane %v2443_v3, %v3581_v33  ;;  %v907_v63 = vpop.f32.mrb[4].mxu0 }
 0x25c   : > { %v963_v13 = vrot.slane %v955_v4, %v3583_v40  ;;  %v970_v14 = vrot.slane %v956_v5, %v3583_v40  ;;  %v979_v15 = vrot.slane %v971_v7, %v3583_v40  ;;  %v986_v16 = vrot.slane %v972_v8, %v3583_v40  ;;  %v2535_v1 = vpop.f32.mrb[5].mxu0  ;;  %v2446_v4 = vld [vmem:[%s3881_s1] ss:$0 sm:$0xff]  ;;  %s3884_s1 = sld [smem:[#allocation30_spill]] }
 0x25d   : > { %v1173_v17 = vcombine.low %v1148_v9, %v1156_v10  ;;  %v1189_v18 = vcombine.low %v1164_v11, %v1172_v12  ;;  %v1174_v19 = vcombine.high %v1148_v9, %v1156_v10  ;;  %v1190_v20 = vcombine.high %v1164_v11, %v1172_v12  ;;  %v910_v2 = vpop.f32.mrb[6].mxu0 }
 0x25e   : > { %v991_v21 = vcombine.low %v963_v13, %v970_v14  ;;  %v2440_v22 = vcombine.high %v963_v13, %v970_v14  ;;  %v1007_v23 = vcombine.low %v979_v15, %v986_v16  ;;  %v2441_v24 = vcombine.high %v979_v15, %v986_v16  ;;  %v2536_v3 = vpop.f32.mrb[7].mxu0 }
 0x25f   : > { %v1181_v25 = vrot.slane %v1173_v17, %v3583_v40  ;;  %v1197_v26 = vrot.slane %v1189_v18, %v3583_v40  ;;  %v1188_v34 = vrot.slane %v1174_v19, %v3583_v40  ;;  %v1204_v35 = vrot.slane %v1190_v20, %v3583_v40 }
 0x260   : > { %v998_v27 = vrot.slane %v991_v21, %v3581_v33  ;;  %v1006_v28 = vrot.slane %v2440_v22, %v3581_v33  ;;  %v1014_v29 = vrot.slane %v1007_v23, %v3581_v33  ;;  %v1022_v30 = vrot.slane %v2441_v24, %v3581_v33 }
 0x261   : > { %v1205_v31 = vcombine.low %v1181_v25, %v1197_v26  ;;  %v1206_v32 = vcombine.high %v1181_v25, %v1197_v26  ;;  %v1207_v45 = vcombine.low %v1188_v34, %v1204_v35  ;;  %v1208_v46 = vcombine.high %v1188_v34, %v1204_v35 }
 0x262   : > { %v1023_v36 = vcombine.low %v998_v27, %v1006_v28  ;;  %v1039_v37 = vcombine.low %v1014_v29, %v1022_v30  ;;  %v1024_v47 = vcombine.high %v998_v27, %v1006_v28  ;;  %v1040_v48 = vcombine.high %v1014_v29, %v1022_v30  ;;  %v2436_v30 = vld [vmem:[#allocation10] ss:$0 sm:$0xff] }
 0x263   : > { %v1209_v38 = vpack.c.bf16 %v1205_v31, %v1205_v31  ;;  %v1210_v39 = vpack.c.bf16 %v1206_v32, %v1206_v32  ;;  %v1211_v51 = vpack.c.bf16 %v1207_v45, %v1207_v45  ;;  %v1212_v52 = vpack.c.bf16 %v1208_v46, %v1208_v46 }
 0x264   : > { %v1031_v41 = vrot.slane %v1023_v36, %v3583_v40  ;;  %v1047_v42 = vrot.slane %v1039_v37, %v3583_v40  ;;  %v1038_v55 = vrot.slane %v1024_v47, %v3583_v40  ;;  %v1054_v56 = vrot.slane %v1040_v48, %v3583_v40 }
 0x265   : > { %v1375_v43 = vsel %vm1370_vm2, %v1209_v38, 0  ;;  %v1421_v44 = vsel %vm1370_vm2, %v1210_v39, 0  ;;  %v1467_v57 = vsel %vm1370_vm2, %v1211_v51, 0  ;;  %v1513_v58 = vsel %vm1370_vm2, %v1212_v52, 0 }
 0x266   : > { %2538 = vmatpush3.bf16.xpose.msra.mxu1 %v1375_v43  ;;  %2544 = vmatpush3.bf16.xpose.msra.mxu0 %v1421_v44  ;;  %v1055_v49 = vcombine.low %v1031_v41, %v1047_v42  ;;  %v1056_v50 = vcombine.high %v1031_v41, %v1047_v42  ;;  %v1057_v59 = vcombine.low %v1038_v55, %v1054_v56 }
 0x267   : > { %2549 = vmatprep.subr.bf16.mxu1 %v3128_v0  ;;  %2555 = vmatprep.subr.bf16.mxu0 %v3128_v0  ;;  %v1058_v60 = vcombine.high %v1038_v55, %v1054_v56  ;;  %v908_v31 = vadd.f32 %v2436_v30, %v907_v63 }
 0x268   : > { %v1059_v53 = vpack.c.bf16 %v1055_v49, %v1055_v49  ;;  %v1060_v54 = vpack.c.bf16 %v1056_v50, %v1056_v50  ;;  %v1061_v61 = vpack.c.bf16 %v1057_v59, %v1057_v59 }
 0x269   : > { %v1062_v62 = vpack.c.bf16 %v1058_v60, %v1058_v60 }
 0x26d   : > { %2540 = vmatmul.mubr.msk.bf16.vlgmr.msra.gmra.mrb[4].mxu1 %vm1370_vm2, %v1059_v53  ;;  %2546 = vmatmul.mubr.msk.bf16.vlgmr.msra.gmra.mrb[8].mxu0 %vm1370_vm2, %v1060_v54 }
 0x26e   : > { %2550 = vmatpush3.bf16.xpose.msra.mxu1 %v1467_v57  ;;  %2556 = vmatpush3.bf16.xpose.msra.mxu0 %v1513_v58 }
 0x26f   : > { %2551 = vmatprep.mubr.msk.bf16.mxu1 %vm3129_vm0, %v3128_v0  ;;  %2557 = vmatprep.mubr.msk.bf16.mxu0 %vm3129_vm0, %v3128_v0 }
 0x270   : > { %2561 = vmatprep.subr.bf16.mxu1 %v3128_v0  ;;  %2567 = vmatprep.subr.bf16.mxu0 %v3128_v0 }
 0x275   : > { %2552 = vmatmul.mubr.msk.bf16.vlgmr.msra.gmra.mrb[8].mxu1 %vm1370_vm2, %v1061_v61  ;;  %2558 = vmatmul.mubr.msk.bf16.vlgmr.msra.gmra.mrb[12].mxu0 %vm1370_vm2, %v1062_v62 }
 0x276   : > { %2563 = vmatprep.mubr.msk.bf16.mxu1 %vm3129_vm0, %v3128_v0  ;;  %2569 = vmatprep.mubr.msk.bf16.mxu0 %vm3129_vm0, %v3128_v0 }
 0x340   : > { %v1411_v5 = vpop.f32.mrb[4].mxu1  ;;  %v1457_v7 = vpop.f32.mrb[8].mxu0 }
 0x341   : > { %v1412_v8 = vadd.f32 %v2446_v4, %v1411_v5  ;;  %v1458_v9 = vadd.f32 %v2446_v4, %v1457_v7  ;;  %v2541_v10 = vpop.f32.mrb[5].mxu1  ;;  %v2547_v11 = vpop.f32.mrb[9].mxu0 }
 0x342   : > { %v1414_v12 = vpop.f32.mrb[6].mxu1  ;;  %v1460_v13 = vpop.f32.mrb[10].mxu0 }
 0x343   : > { %v2542_v14 = vpop.f32.mrb[7].mxu1  ;;  %v2548_v15 = vpop.f32.mrb[11].mxu0  ;;  %v1555_v16 = vsel %vm1370_vm2, %v1412_v8, -inf  ;;  %v1558_v17 = vsel %vm1370_vm2, %v1458_v9, -inf }
 0x344   : > { %1556 = vmax.xlane.f32.xlu0 %v1555_v16  ;;  %1559 = vmax.xlane.f32.xlu1 %v1558_v17 }
 0x348   : > { %v1503_v18 = vpop.f32.mrb[8].mxu1  ;;  %v1549_v19 = vpop.f32.mrb[12].mxu0 }
 0x349   : > { %v1504_v20 = vadd.f32 %v2446_v4, %v1503_v18  ;;  %v2553_v21 = vpop.f32.mrb[9].mxu1  ;;  %v2559_v22 = vpop.f32.mrb[13].mxu0  ;;  %v1550_v25 = vadd.f32 %v2446_v4, %v1549_v19 }
 0x34a   : > { %v1506_v23 = vpop.f32.mrb[10].mxu1  ;;  %v1552_v24 = vpop.f32.mrb[14].mxu0 }
 0x34b   : > { %v2554_v26 = vpop.f32.mrb[11].mxu1  ;;  %v2560_v27 = vpop.f32.mrb[15].mxu0  ;;  %v1561_v28 = vsel %vm1370_vm2, %v1504_v20, -inf  ;;  %v1564_v29 = vsel %vm1370_vm2, %v1550_v25, -inf }
 0x34c   : > { %1562 = vmax.xlane.f32.xlu0 %v1561_v28 }
 0x350   : > { %1565 = vmax.xlane.f32.xlu0 %v1564_v29 }
 0x355   : > { %1214 = vrot.lane.b32.xlu1 %v908_v31, %s3131_s13  ;;  %s2425_s13 = sshll.u32 %s3509_s19, 3 }
 0x356   : > { %s700_s22 = scalar_lea.vmem [#allocation16], %s2425_s13 }
 0x357   : > { %s2235_s16 = sshll.u32 %s700_s22, 4  ;;  %s3771_s16 = int_to_ptr.vmem [resolvable:$true] %s2235_s16 }
 0x3d1   : > { %v1557_v32 = vpop.xlane.xlu0 %1556  ;;  %v1560_v34 = vpop.xlane.xlu1 %1559 }
 0x3d2   : > { %v1567_v35 = vsub.f32 %v1412_v8, %v1557_v32  ;;  %v1568_v36 = vsub.f32 %v1458_v9, %v1560_v34 }
 0x3d4   : > { %v1571_v37 = vmul.f32 1.442695, %v1567_v35  ;;  %v1573_v38 = vmul.f32 1.442695, %v1568_v36 }
 0x3d5   : > { %v1215_v54 = vpop.permute.xlu1 %1214 }
 0x3d6   : > { %2772 = vpow2.f32 %v1571_v37 }
 0x3d7   : > { %2774 = vpow2.f32 %v1573_v38 }
 0x3d9   : > { %v1563_v39 = vpop.xlane.xlu0 %1562 }
 0x3da   : > { %v1569_v41 = vsub.f32 %v1504_v20, %v1563_v39 }
 0x3dc   : > { %v1575_v42 = vmul.f32 1.442695, %v1569_v41 }
 0x3dd   : > { %v1566_v43 = vpop.xlane.xlu0 %1565 }
 0x3de   : > { %2776 = vpow2.f32 %v1575_v42  ;;  %v1570_v44 = vsub.f32 %v1550_v25, %v1566_v43 }
 0x3e0   : > { %v3644_v45 = vpop.eup %2772  ;;  %v1577_v46 = vmul.f32 1.442695, %v1570_v44 }
 0x3e1   : > { %v3646_v47 = vpop.eup %2774  ;;  %v1579_v48 = vsel %vm1370_vm2, %v3644_v45, 0.0 }
 0x3e2   : > { %2778 = vpow2.f32 %v1577_v46  ;;  %1580 = vadd.xlane.f32.xlu1 %v1579_v48  ;;  %v1582_v49 = vsel %vm1370_vm2, %v3646_v47, 0.0 }
 0x3e3   : > { %1583 = vadd.xlane.f32.xlu0 %v1582_v49 }
 0x3e8   : > { %v3652_v50 = vpop.eup %2776 }
 0x3e9   : > { %v1585_v51 = vsel %vm1370_vm2, %v3652_v50, 0.0 }
 0x3ea   : > { %1586 = vadd.xlane.f32.xlu1 %v1585_v51 }
 0x3ec   : > { %v3656_v52 = vpop.eup %2778 }
 0x3ed   : > { %v1588_v53 = vsel %vm1370_vm2, %v3656_v52, 0.0 }
 0x3ee   : > { %1589 = vadd.xlane.f32.xlu0 %v1588_v53 }
 0x3fb   : > { %1220 = vrot.lane.b32.xlu1 %v908_v31, %s3130_s9  ;;  %s3137_s9 = smov 24  }
 0x404   : > { %1217 = vrot.lane.b32.xlu0 %v908_v31, %s3132_s20  ;;  %s2474_s20 = sshll.u32 %s3876_s18, 7  ;;  %s3138_s18 = smov [#allocation16]  }
 0x405   : > { %s3022_s13 = sshll.u32 %s3138_s18, 4  ;;  %s3023_s13 = int_to_ptr.vmem [resolvable:$false] %s3022_s13 }
 0x406   : > { %p3025_p4 = scmp.lt.s32.totalorder %s3771_s16, %s3023_s13 }
 0x46f   : > { %v1581_v55 = vpop.xlane.xlu1 %1580 }
 0x470   : > { %v1584_v56 = vpop.xlane.xlu0 %1583  ;;  %2780 = vrcp.f32 %v1581_v55 }
 0x471   : > { %2782 = vrcp.f32 %v1584_v56 }
 0x477   : > { %v1587_v57 = vpop.xlane.xlu1 %1586 }
 0x478   : > { %2784 = vrcp.f32 %v1587_v57 }
 0x47a   : > { %v2781_v2 = vpop.eup %2780 }
 0x47b   : > { %v1221_v58 = vpop.permute.xlu1 %1220  ;;  %v1590_v59 = vpop.xlane.xlu0 %1589  ;;  %v1595_v12 = vmul.f32 %v2781_v2, %v1581_v55 }
 0x47c   : > { %v1239_v60 = vcombine.low %v1215_v54, %v1221_v58  ;;  %v1240_v61 = vcombine.high %v1215_v54, %v1221_v58  ;;  %2786 = vrcp.f32 %v1590_v59  ;;  %v2783_v8 = vpop.eup %2782 }
 0x47d   : > { %v1596_v14 = vmul.f32 %v2783_v8, %v1584_v56  ;;  %v1599_v24 = vsub.f32 2.0, %v1595_v12 }
 0x47e   : > { %v1247_v3 = vrot.slane %v1239_v60, %v3581_v33  ;;  %v1254_v4 = vrot.slane %v1240_v61, %v3581_v33 }
 0x47f   : > { %v1218_v62 = vpop.permute.xlu0 %1217  ;;  %v1600_v25 = vsub.f32 2.0, %v1596_v14  ;;  %v1603_v36 = vmul.f32 %v2781_v2, %v1599_v24 }
 0x480   : > { %v1223_v63 = vcombine.low %v908_v31, %v1218_v62  ;;  %v1224_v1 = vcombine.high %v908_v31, %v1218_v62 }
 0x481   : > { %v1604_v37 = vmul.f32 %v2783_v8, %v1600_v25  ;;  %v1607_v53 = vmul.f32 %v3644_v45, %v1603_v36  ;;  %v2764_v36 = vld [vmem:[%s3882_s27] sm:$0xff]  }
 0x482   : > { %v1231_v5 = vrot.slane %v1223_v63, %v3581_v33  ;;  %v1238_v7 = vrot.slane %v1224_v1, %v3581_v33  ;;  %v2785_v23 = vpop.eup %2784 }
 0x483   : > { %v1597_v41 = vmul.f32 %v2785_v23, %v1587_v57  ;;  %v1608_v54 = vmul.f32 %v3646_v47, %v1604_v37  ;;  %v1611_v63 = vpack.c.bf16 %v1607_v53, %v1607_v53 }
 0x484   : > { %v1255_v9 = vcombine.low %v1231_v5, %v1247_v3  ;;  %v1256_v10 = vcombine.high %v1231_v5, %v1247_v3  ;;  %v1271_v11 = vcombine.low %v1238_v7, %v1254_v4  ;;  %v1272_v13 = vcombine.high %v1238_v7, %v1254_v4 }
 0x485   : > { %v1601_v55 = vsub.f32 2.0, %v1597_v41  ;;  %v1612_v1 = vpack.c.bf16 %v1608_v54, %v1608_v54 }
 0x486   : > { %v1263_v15 = vrot.slane %v1255_v9, %v3583_v40  ;;  %v1270_v16 = vrot.slane %v1256_v10, %v3583_v40  ;;  %v1279_v17 = vrot.slane %v1271_v11, %v3583_v40  ;;  %v1286_v18 = vrot.slane %v1272_v13, %v3583_v40  ;;  %v2787_v28 = vpop.eup %2786 }
 0x487   : > { %v1598_v42 = vmul.f32 %v2787_v28, %v1590_v59  ;;  %v1605_v2 = vmul.f32 %v2785_v23, %v1601_v55 }
 0x488   : > { %v1291_v19 = vcombine.low %v1263_v15, %v1270_v16  ;;  %v2444_v20 = vcombine.high %v1263_v15, %v1270_v16  ;;  %v1307_v21 = vcombine.low %v1279_v17, %v1286_v18  ;;  %v2445_v22 = vcombine.high %v1279_v17, %v1286_v18 }
 0x489   : > { %v1602_v56 = vsub.f32 2.0, %v1598_v42  ;;  %v1609_v4 = vmul.f32 %v3652_v50, %v1605_v2 }
 0x48a   : > { %v1298_v26 = vrot.slane %v1291_v19, %v3581_v33  ;;  %v1306_v27 = vrot.slane %v2444_v20, %v3581_v33  ;;  %v1314_v29 = vrot.slane %v1307_v21, %v3581_v33  ;;  %v1322_v30 = vrot.slane %v2445_v22, %v3581_v33 }
 0x48b   : > { %v1606_v3 = vmul.f32 %v2787_v28, %v1602_v56  ;;  %v1613_v7 = vpack.c.bf16 %v1609_v4, %v1609_v4 }
 0x48c   : > { %v1323_v31 = vcombine.low %v1298_v26, %v1306_v27  ;;  %v1324_v32 = vcombine.high %v1298_v26, %v1306_v27  ;;  %v1339_v34 = vcombine.low %v1314_v29, %v1322_v30  ;;  %v1340_v35 = vcombine.high %v1314_v29, %v1322_v30 }
 0x48d   : > { %v1610_v5 = vmul.f32 %v3656_v52, %v1606_v3 }
 0x48e   : > { %v1331_v38 = vrot.slane %v1323_v31, %v3583_v40  ;;  %v1338_v39 = vrot.slane %v1324_v32, %v3583_v40  ;;  %v1347_v43 = vrot.slane %v1339_v34, %v3583_v40  ;;  %v1354_v44 = vrot.slane %v1340_v35, %v3583_v40 }
 0x48f   : > { %v1614_v8 = vpack.c.bf16 %v1610_v5, %v1610_v5 }
 0x490   : > { %v1355_v46 = vcombine.low %v1331_v38, %v1347_v43  ;;  %v1356_v48 = vcombine.high %v1331_v38, %v1347_v43  ;;  %v1357_v49 = vcombine.low %v1338_v39, %v1354_v44  ;;  %v1358_v51 = vcombine.high %v1338_v39, %v1354_v44 }
 0x492   : > { %v1359_v58 = vpack.c.bf16 %v1355_v46, %v1355_v46  ;;  %v1360_v60 = vpack.c.bf16 %v1356_v48, %v1356_v48  ;;  %v1361_v61 = vpack.c.bf16 %v1357_v49, %v1357_v49  ;;  %v1362_v62 = vpack.c.bf16 %v1358_v51, %v1358_v51  ;;  %v2765_v48 = vld [vmem:[%s3883_s17 + $0x8] sm:$0xff]  }
 0x494   : > { %v1620_v57 = vsel %vm1618_vm3, %v1359_v58, 0  ;;  %v1666_v59 = vsel %vm1618_vm3, %v1360_v60, 0  ;;  %v1712_v45 = vsel %vm1618_vm3, %v1361_v61, 0  ;;  %v1758_v47 = vsel %vm1618_vm3, %v1362_v62, 0 }
 0x495   : > { %2562 = vmatpush3.bf16.msra.mxu1 %v1620_v57  ;;  %2568 = vmatpush3.bf16.msra.mxu0 %v1666_v59 }
 0x496   : > { %2573 = vmatprep.subr.bf16.mxu1 %v3128_v0  ;;  %2579 = vmatprep.subr.bf16.mxu0 %v3128_v0 }
 0x498   : > { %2564 = vmatmul.mubr.msk.bf16.vlgmr.msra.gmra.mrb[12].mxu1 %vm1370_vm2, %v1611_v63  ;;  %2570 = vmatmul.mubr.msk.bf16.vlgmr.msra.gmra.mrb[16].mxu0 %vm1370_vm2, %v1612_v1 }
 0x499   : > { %2574 = vmatpush3.bf16.msra.mxu1 %v1712_v45  ;;  %2580 = vmatpush3.bf16.msra.mxu0 %v1758_v47 }
 0x49a   : > { %2575 = vmatprep.mubr.msk.bf16.mxu1 %vm3129_vm0, %v3128_v0  ;;  %2581 = vmatprep.mubr.msk.bf16.mxu0 %vm3129_vm0, %v3128_v0 }
 0x49b   : > { %2585 = vmatprep.subr.bf16.mxu1 %v3128_v0  ;;  %2593 = vmatprep.subr.bf16.mxu0 %v3128_v0 }
 0x4a0   : > { %2576 = vmatmul.mubr.msk.bf16.vlgmr.msra.gmra.mrb[16].mxu1 %vm1370_vm2, %v1613_v7  ;;  %2582 = vmatmul.mubr.msk.bf16.vlgmr.msra.gmra.mrb[20].mxu0 %vm1370_vm2, %v1614_v8  ;;  %v2457_v8 = vld [vmem:[#allocation11] ss:$0 sm:$0xff] }
 0x4a1   : > { %2589 = vmatprep.mubr.msk.bf16.mxu1 %vm3129_vm0, %v3128_v0  ;;  %2597 = vmatprep.mubr.msk.bf16.mxu0 %vm3129_vm0, %v3128_v0 }
 0x4a2   : > { %2586 = vmatpush3.bf16.msra.mxu1 %v2764_v36 }
 0x4a3   : > { %2587 = vmatprep.subr.bf16.mxu1 %v3128_v0 }
 0x4a6   : > { %2588 = vmatpush3.bf16.msra.mxu1 %v2765_v48 }
 0x4a7   : > { %2601 = vmatprep.subr.bf16.mxu1 %v3128_v0 }
 0x56b   : > { %v1656_v50 = vpop.f32.mrb[12].mxu1  ;;  %v1702_v52 = vpop.f32.mrb[16].mxu0 }
 0x56c   : > { %v2565_v9 = vpop.f32.mrb[13].mxu1  ;;  %v2571_v10 = vpop.f32.mrb[17].mxu0 }
 0x56d   : > { %v1659_v11 = vpop.f32.mrb[14].mxu1  ;;  %v1705_v12 = vpop.f32.mrb[18].mxu0 }
 0x56e   : > { %v2566_v13 = vpop.f32.mrb[15].mxu1  ;;  %v2572_v14 = vpop.f32.mrb[19].mxu0 }
 0x573   : > { %v1748_v15 = vpop.f32.mrb[16].mxu1  ;;  %v1794_v16 = vpop.f32.mrb[20].mxu0 }
 0x574   : > { %v1800_v17 = vcombine.low %v1656_v50, %v1748_v15  ;;  %v1801_v18 = vcombine.high %v1656_v50, %v1748_v15  ;;  %v1816_v19 = vcombine.low %v1702_v52, %v1794_v16  ;;  %v1817_v20 = vcombine.high %v1702_v52, %v1794_v16  ;;  %v2577_v21 = vpop.f32.mrb[17].mxu1  ;;  %v2583_v22 = vpop.f32.mrb[21].mxu0 }
 0x575   : > { %v1751_v23 = vpop.f32.mrb[18].mxu1  ;;  %v1797_v24 = vpop.f32.mrb[22].mxu0  ;;  %v2769_v21 = vld [vmem:[%s3885_s2 + $0x8] sm:$0xff]  }
 0x576   : > { %v1808_v25 = vrot.slane %v1800_v17, %v3581_v33  ;;  %v1815_v26 = vrot.slane %v1801_v18, %v3581_v33  ;;  %v1824_v27 = vrot.slane %v1816_v19, %v3581_v33  ;;  %v1831_v28 = vrot.slane %v1817_v20, %v3581_v33  ;;  %v2578_v29 = vpop.f32.mrb[19].mxu1  ;;  %v2584_v30 = vpop.f32.mrb[23].mxu0  ;;  %v2766_v19 = vld [vmem:[%s3884_s1] sm:$0xff]   ;;  %v2767_v20 = vld [vmem:[%s3884_s1 + $0x8] sm:$0xff]   ;;  %s3018_s1 = scalar_lea.vmem %s3771_s16, 128 }
 0x577   : > { %2594 = vmatpush3.bf16.msra.mxu0 %v2766_v19  ;;  %p3019_p5 = scmp.ne.s32.totalorder %s3771_s16, %s3018_s1 }
 0x578   : > { %v1832_v31 = vcombine.low %v1808_v25, %v1824_v27  ;;  %v1833_v32 = vcombine.high %v1808_v25, %v1824_v27  ;;  %v1848_v34 = vcombine.low %v1815_v26, %v1831_v28  ;;  %v1849_v35 = vcombine.high %v1815_v26, %v1831_v28  ;;  %2595 = vmatprep.subr.bf16.mxu0 %v3128_v0  ;;  %v2461_v26 = vld [vmem:[#allocation13] ss:$0 sm:$0xff]  ;;  %v2462_v28 = vld [vmem:[#allocation14] ss:$0 sm:$0xff] }
 0x579   : > { %p3020_p1 = pnand %p3019_p5, %p3889_p10 }
 0x57a   : > { %v1840_v37 = vrot.slane %v1832_v31, %v3583_v40  ;;  %v1847_v38 = vrot.slane %v1833_v32, %v3583_v40  ;;  %v1856_v39 = vrot.slane %v1848_v34, %v3583_v40  ;;  %v1863_v41 = vrot.slane %v1849_v35, %v3583_v40  ;;  %v2770_v32 = vld [vmem:[%s3885_s2 + $0x10] sm:$0xff]   ;;  %v2771_v34 = vld [vmem:[%s3885_s2 + $0x18] sm:$0xff]   ;;  %v2463_v35 = vld [vmem:[%s3886_s30] ss:$0 sm:$0xff] }
 0x57b   : > { %2596 = vmatpush3.bf16.msra.mxu0 %v2767_v20  ;;  %p3021_p2 = pneg %p3020_p1 }
 0x57c   : > { %v1868_v42 = vcombine.low %v1840_v37, %v1847_v38  ;;  %v2455_v43 = vcombine.high %v1840_v37, %v1847_v38  ;;  %v1884_v44 = vcombine.low %v1856_v39, %v1863_v41  ;;  %v2456_v46 = vcombine.high %v1856_v39, %v1863_v41 }
 0x57e   : > { %v1875_v49 = vrot.slane %v1868_v42, %v3581_v33  ;;  %v1883_v51 = vrot.slane %v2455_v43, %v3581_v33  ;;  %v1891_v53 = vrot.slane %v1884_v44, %v3581_v33  ;;  %v1899_v54 = vrot.slane %v2456_v46, %v3581_v33 }
 0x580   : > { %v1901_v55 = vcombine.high %v1875_v49, %v1883_v51  ;;  %v1917_v56 = vcombine.high %v1891_v53, %v1899_v54  ;;  %v1900_v58 = vcombine.low %v1875_v49, %v1883_v51  ;;  %v1916_v60 = vcombine.low %v1891_v53, %v1899_v54 }
 0x582   : > { %v1915_v57 = vrot.slane %v1901_v55, %v3583_v40  ;;  %v1931_v59 = vrot.slane %v1917_v56, %v3583_v40  ;;  %v1908_v61 = vrot.slane %v1900_v58, %v3583_v40  ;;  %v1924_v62 = vrot.slane %v1916_v60, %v3583_v40 }
 0x584   : > { %v1934_v63 = vcombine.low %v1915_v57, %v1931_v59  ;;  %v1933_v1 = vcombine.high %v1908_v61, %v1924_v62  ;;  %v1935_v2 = vcombine.high %v1915_v57, %v1931_v59  ;;  %v1932_v3 = vcombine.low %v1908_v61, %v1924_v62 }
 0x586   : > { %1941 = vrot.lane.b32.xlu0 %v1934_v63, %s3135_s0  ;;  %1937 = vrot.lane.b32.xlu1 %v1933_v1, %s3136_s3  ;;  %s3888_s0 = sld [smem:[#allocation34_spill]] }
 0x58a   : > { %1945 = vrot.lane.b32.xlu1 %v1935_v2, %s3137_s9  ;;  %s3887_s9 = sld [smem:[#allocation33_spill]] }
 0x58c   : > { %s3769_s3 = scalar_lea.hbm %s3888_s0, %s2474_s20 }
 0x5f8   : > { %v1938_v33 = vpop.permute.xlu1 %1937  ;;  %v1942_v45 = vpop.permute.xlu0 %1941 }
 0x5f9   : > { %v1948_v47 = vsel %vm1370_vm2, %v1932_v3, %v1938_v33 }
 0x5fa   : > { %v1950_v5 = vsel %vm1949_vm4, %v1948_v47, %v1942_v45 }
 0x5fc   : > { %v1946_v4 = vpop.permute.xlu1 %1945 }
 0x5fd   : > { %v1952_v7 = vsel %vm1951_vm5, %v1950_v5, %v1946_v4 }
 0x5fe   : > { %v1953_v40 = vpack.c.bf16 %v1952_v7, %v1952_v7 }
 0x600   : > { %2590 = vmatmul.mubr.msk.bf16.vlgmr.msra.gmra.mrb[20].mxu1 %vm740_vm1, %v1953_v40 }
 0x601   : > { %2609 = vmatprep.mubr.msk.bf16.mxu1 %vm3129_vm0, %v3128_v0 }
 0x6d3   : > { %v2014_v50 = vpop.f32.mrb[20].mxu1 }
 0x6d4   : > { %v2015_v52 = vadd.f32 %v2457_v8, %v2014_v50  ;;  %v2591_v9 = vpop.f32.mrb[21].mxu1 }
 0x6d5   : > { %v2017_v10 = vpop.f32.mrb[22].mxu1 }
 0x6d6   : > { %v2592_v11 = vpop.f32.mrb[23].mxu1  ;;  %v2022_v12 = vadd.f32 %v2015_v52, %v3555_v6  ;;  %v2768_v6 = vld [vmem:[%s3885_s2] sm:$0xff]   ;;  %s3024_s2 = scalar_lea.vmem %s3023_s13, 256 }
 0x6d7   : > { %2602 = vmatpush3.bf16.msra.mxu1 %v2768_v6  ;;  %p3026_p9 = scmp.lt.s32.totalorder %s3024_s2, %s3018_s1 }
 0x6d8   : > { %v2023_v13 = vsel %vm740_vm1, %v2022_v12, 0.0  ;;  %2603 = vmatprep.subr.bf16.mxu1 %v3128_v0 }
 0x6d9   : > { %2024 = vadd.xlane.f32.xlu0 %v2023_v13  ;;  %p3027_p8 = por %p3026_p9, %p3025_p4 }
 0x6db   : > { %2604 = vmatpush3.bf16.msra.mxu1 %v2769_v21  ;;  %p3028_p3 = pnand %p3027_p8, %p3021_p2 }
 0x6dc   : > { %2605 = vmatprep.subr.bf16.mxu1 %v3128_v0 }
 0x6df   : > { %2606 = vmatpush3.bf16.msra.mxu1 %v2770_v32 }
 0x6e0   : > { %2607 = vmatprep.subr.bf16.mxu1 %v3128_v0  ;;  %v2467_v0 = vld [vmem:[%s3887_s9] ss:$0 sm:$0xff]  ;;  %s2221_s9 = scalar_lea.sflag [#allocation4], %s3509_s19 }
 0x6e3   : > { %2608 = vmatpush3.bf16.msra.mxu1 %v2771_v34 }
 0x766   : > { %v2025_v14 = vpop.xlane.xlu0 %2024 }
 0x767   : > { %v2027_v15 = vmul.f32 0.03125, %v2025_v14 }
 0x769   : > { %v2028_v16 = vsub.f32 %v2022_v12, %v2027_v15 }
 0x76b   : > { %v2029_v17 = vmul.f32 %v2028_v16, %v2028_v16 }
 0x76d   : > { %v2030_v18 = vsel %vm740_vm1, %v2029_v17, 0.0 }
 0x76e   : > { %2031 = vadd.xlane.f32.xlu1 %v2030_v18 }
 0x7fb   : > { %v2032_v22 = vpop.xlane.xlu1 %2031 }
 0x7fc   : > { %v2033_v23 = vmul.f32 0.03125, %v2032_v22 }
 0x7fe   : > { %v2034_v24 = vadd.f32 1e-05, %v2033_v23 }
 0x800   : > { %2788 = vrsqrt.f32 %v2034_v24 }
 0x80a   : > { %v2789_v25 = vpop.eup %2788 }
 0x80b   : > { %v2036_v27 = vmul.f32 %v2789_v25, %v2028_v16 }
 0x80d   : > { %v2043_v29 = vmul.f32 %v2461_v26, %v2036_v27 }
 0x80f   : > { %v2050_v30 = vadd.f32 %v2462_v28, %v2043_v29 }
 0x811   : > { %v2051_v31 = vpack.c.bf16 %v2050_v30, %v2050_v30 }
 0x813   : > { %2598 = vmatmul.mubr.msk.bf16.vlgmr.msra.gmra.mrb[24].mxu0 %vm740_vm1, %v2051_v31 }
 0x8e6   : > { %v2112_v36 = vpop.f32.mrb[24].mxu0 }
 0x8e7   : > { %v2113_v37 = vadd.f32 %v2463_v35, %v2112_v36  ;;  %v2599_v38 = vpop.f32.mrb[25].mxu0 }
 0x8e8   : > { %v2115_v39 = vpop.f32.mrb[26].mxu0 }
 0x8e9   : > { %v2118_v41 = vmax.f32 %v2113_v37, 0.0  ;;  %v2600_v42 = vpop.f32.mrb[27].mxu0 }
 0x8eb   : > { %v2119_v43 = vpack.c.bf16 %v2118_v41, %v2118_v41 }
 0x8ed   : > { %2610 = vmatmul.mubr.msk.bf16.vlgmr.msra.gmra.mrb[24].mxu1 %vm2159_vm6, %v2119_v43 }
 0x9c0   : > { %v2197_v44 = vpop.f32.mrb[24].mxu1 }
 0x9c1   : > { %v2198_v46 = vadd.f32 %v2467_v0, %v2197_v44  ;;  %v2611_v48 = vpop.f32.mrb[25].mxu1 }
 0x9c2   : > { %v2200_v49 = vpop.f32.mrb[26].mxu1 }
 0x9c3   : > { %v2612_v51 = vpop.f32.mrb[27].mxu1  ;;  %v2203_v53 = vadd.f32 %v2198_v46, %v2050_v30 }
 0x9c5   : > { %v2204_v54 = vsel %vm740_vm1, %v2203_v53, 0.0 }
 0x9c6   : > { %2205 = vadd.xlane.f32.xlu0 %v2204_v54 }
 0xa53   : > { %v2206_v55 = vpop.xlane.xlu0 %2205 }
 0xa54   : > { %v2207_v56 = vmul.f32 0.03125, %v2206_v55 }
 0xa56   : > { %v2208_v58 = vsub.f32 %v2203_v53, %v2207_v56 }
 0xa58   : > { %v2209_v60 = vmul.f32 %v2208_v58, %v2208_v58 }
 0xa5a   : > { %v2210_v57 = vsel %vm740_vm1, %v2209_v60, 0.0 }
 0xa5b   : > { %2211 = vadd.xlane.f32.xlu0 %v2210_v57 }
 0xae8   : > { %v2212_v59 = vpop.xlane.xlu0 %2211 }
 0xae9   : > { %v2213_v61 = vmul.f32 0.03125, %v2212_v59 }
 0xaeb   : > { %v2214_v62 = vadd.f32 1e-05, %v2213_v61 }
 0xaed   : > { %2790 = vrsqrt.f32 %v2214_v62 }
 0xaf7   : > { %v2791_v63 = vpop.eup %2790 }
 0xaf8   : > { %v2216_v1 = vmul.f32 %v2791_v63, %v2208_v58 }
 0xafa   : > { %v2217_v2 = vmul.f32 %v2461_v26, %v2216_v1 }
 0xafc   : > { %v2218_v3 = vadd.f32 %v2462_v28, %v2217_v2 }
 0xafe   : > { %2219 = vst.msk [vmem:[%s700_s22] sm:$0xff] %vm740_vm1, %v2218_v3 }
 0xaff   : > { %3031 = shalt.err (!%p3028_p3)
}
 0xb00   : > { %s3032_s19 = scalar_lea.hbm %s3769_s3, 128  ;;  %s3036_s27 = scalar_lea.hbm %s3888_s0, 256 }
 0xb01   : > { %p3033_p12 = scmp.ne.s32.totalorder %s3769_s3, %s3032_s19  ;;  %p3037_p11 = scmp.lt.u32.totalorder %s3769_s3, %s3888_s0 }
 0xb02   : > { %p3038_p7 = scmp.lt.u32.totalorder %s3036_s27, %s3032_s19  ;;  %p3040_p5 = scmp.lt.u32.totalorder %s3032_s19, %s3769_s3 }
 0xb03   : > { %p3034_p13 = pnand %p3033_p12, %p3889_p10 }
 0xb04   : > { %p3039_p6 = por %p3038_p7, %p3037_p11 }
 0xb05   : > { %p3035_p0 = pneg %p3034_p13 }
 0xb06   : > { %p3041_p1 = por %p3040_p5, %p3039_p6 }
 0xb08   : > { %p3042_p2 = pnand %p3041_p1, %p3035_p0 }
 0xb0a   : > { %3045 = shalt.err (!%p3042_p2)
}
 0xb0b   : > { %2643 = dma.vmem_to_hbm [thread:$0]  (%p3889_p10), %s3771_s16, 128, %s3769_s3, %s2221_s9  }
 0xb0c PF: > { %s2247_s1 = sand.u32 1, %s3096_s24   ;;  %p3890_p4 = scmp.ne.s32.totalorder %s3871_s14, 0 }
 0xb0d   : > { %p3891_p9 = scmp.ge.s32.totalorder %s3116_s29, 2  ;;  %s2248_s2 = scalar_lea.sflag [#allocation4], %s2247_s1 }
 0xb0f   : > { %p2672_p8 = pnand %p3891_p9, %p3890_p4 }
 0xb11   : > { %3091 = dma.done.wait (!%p2672_p8), %s2248_s2, 128  }
 0xb12   : > { %3093 = vsyncadd (!%p2672_p8), %s2248_s2, 4294967168  ;;  %s37_s29 = sadd.s32 1, %s3116_s29   ;;  %s3892_s24 = smov %s3100_s25 }
 0xb13   : > { %p34_p3 = scmp.ge.s32.totalorder %s37_s29, 4   ;;  %s3893_s25 = smov %s3104_s26 }
 0xb14   : > { %s3894_s26 = smov %s3460_s23  ;;  %s3895_s27 = smov %s3112_s28 }
 0xb15   : > { %s3896_s28 = smov %s3898_s15  ;;  %36 = sbr.rel (!%p34_p3) target bundleno = 22 (0x16), region = 167 }
 0xb1c   :  { %2253 = vsyncpa [#allocation3], 1 }
 0xb1d   :  { %2255 = vsyncpa [#allocation3 + $0x1], 1 }
 0xb1e   :  { %2256 = vsyncpa [#allocation6], 1 }
 0xb1f   :  { %2257 = vsyncpa [#allocation9], 1 }
 0xb20   :  { %2258 = vsyncpa [#allocation12], 1 }
 0xb21   :  { %2259 = vsyncpa [#allocation15], 1 }
 0xb22   :  { %2260 = vsyncpa [#allocation4], 1 }
 0xb23   :  { %2262 = vsyncpa [#allocation4 + $0x1], 1 }

</bundles_post_ra>
